<compile_context>
chip_gen: v7x
topology: tpu7x:2x2x1
jax: 0.10.0
libtpu: 0.0.40
codegen_flags: <defaults>
</compile_context>

<pallas_src>
import jax
import jax.numpy as jnp
from jax.experimental import pallas as pl
from jax.experimental.pallas import tpu as pltpu

C = 512                       # hidden width fixed by nn.Linear(512, 512)
POOL_K = 16                   # AvgPool1d(kernel_size=16, stride=16)
VMEM_WS_BUDGET = 16 << 20     # per-step double-buffered working-set budget
VMEM_LIMIT = 32 << 20         # explicit scoped-VMEM limit (safe on all gens)


# ----------------------------------------------------------------------------
# Fused gating kernel: one (batch, spatial-tile) grid step, all VPU/EUP work.
# ----------------------------------------------------------------------------
def fuse_kernel(vis_ref, bmap_ref, lmap_ref, cmap_ref, mask_ref, o_ref):
    # vis_ref  : (C, 1)    f32       per-channel gate from vis_linear_b2
    # bmap_ref : (C, tHW)  in-dtype  boundary map tile
    # lmap_ref : (C, tHW)  in-dtype  local map tile
    # cmap_ref : (C, tHW)  in-dtype  content map tile
    # mask_ref : (1, tHW)  in-dtype  spatial mask tile (broadcast over C)
    # o_ref    : (C, tHW)  out-dtype fused output tile
    vis = vis_ref[...]                                    # (C, 1), broadcasts over HW
    b = bmap_ref[...].astype(jnp.float32)
    l = lmap_ref[...].astype(jnp.float32)
    c = cmap_ref[...].astype(jnp.float32)
    m = mask_ref[...].astype(jnp.float32)                 # (1, tHW)
    # sigmoid(x) == 0.5 * (tanh(0.5 * x) + 1): one EUP push instead of exp+recip.
    gate_b2 = 0.5 * (jnp.tanh(0.5 * (b * vis)) + 1.0)     # (C, tHW)
    gate_b3 = 0.5 * (jnp.tanh(0.5 * (gate_b2 * l)) + 1.0)
    o_ref[...] = (gate_b3 * c * m).astype(o_ref.dtype)


def _pick_hw_tile(hw_pad, batch, in_bytes, out_bytes):
    """Pick a 128-multiple spatial tile that divides hw_pad, fits the VMEM
    working-set budget (2 buffers per stream), and keeps >= 4 grid steps
    for megacore sharding when possible."""
    # per-column double-buffered bytes: 3 input maps + output (C rows) + mask.
    per_col = 2 * C * (3 * in_bytes + out_bytes) + 2 * in_bytes
    t = max(128, min(hw_pad, (VMEM_WS_BUDGET // per_col) // 128 * 128))
    while hw_pad % t != 0:              # hw_pad is a multiple of 128 -> terminates
        t -= 128
    # deepen the grid so both v7x TensorCores get work on small problems.
    while batch * (hw_pad // t) < 4 and t > 128 and t % 256 == 0:
        t //= 2
    return t


def second_fuse_forward(boundary_map, local_map, content_map, map_mask, vis_h,
                        params, *, out_dtype=None):
    B, Cc, H, W = boundary_map.shape
    assert Cc == C, boundary_map.shape
    HW = H * W
    in_dtype = boundary_map.dtype
    out_dtype = out_dtype if out_dtype is not None else content_map.dtype

    # --- AvgPool1d(16,16) + squeeze + Linear(512,512): trivial (B, 512) work,
    #     done in plain jnp (no separate pallas_call / HBM round trip).
    Bv, Cv, L = vis_h.shape
    assert Bv == B and Cv == C and L == POOL_K, vis_h.shape
    vis_pool = jnp.mean(vis_h.astype(jnp.float32), axis=-1)               # (B, C)
    vis_proj = (vis_pool @ params["w_b2"].astype(jnp.float32).T
                + params["b_b2"].astype(jnp.float32))                     # (B, C)
    vis_proj = vis_proj.reshape(B, C, 1)                                  # f32

    # --- flatten spatial dims; stream maps in their NATIVE dtype (no wrapper
    #     converts: an extra convert pass costs more than it saves).
    bmap = boundary_map.reshape(B, C, HW)
    lmap = local_map.reshape(B, C, HW)
    cmap = content_map.reshape(B, C, HW)
    mask = map_mask.reshape(B, 1, HW)

    # --- pad HW up to a multiple of 128 (lane-dense blocks, unmasked stores,
    #     deep pipeline).  No-op when already aligned.
    hw_pad = ((HW + 127) // 128) * 128
    if hw_pad != HW:
        pad = ((0, 0), (0, 0), (0, hw_pad - HW))
        bmap = jnp.pad(bmap, pad)
        lmap = jnp.pad(lmap, pad)
        cmap = jnp.pad(cmap, pad)
        mask = jnp.pad(mask, pad)

    in_bytes = jnp.dtype(in_dtype).itemsize
    out_bytes = jnp.dtype(out_dtype).itemsize
    t_hw = _pick_hw_tile(hw_pad, B, in_bytes, out_bytes)
    n_hw = hw_pad // t_hw

    cost = pl.CostEstimate(
        flops=10 * B * C * HW,
        transcendentals=2 * B * C * HW,
        bytes_accessed=(B * C * 4
                        + 3 * B * C * HW * in_bytes
                        + B * HW * in_bytes
                        + B * C * HW * out_bytes))

    out = pl.pallas_call(
        fuse_kernel,
        grid=(B, n_hw),
        out_shape=jax.ShapeDtypeStruct((B, C, hw_pad), out_dtype),
        in_specs=[
            pl.BlockSpec((None, C, 1), lambda b, s: (b, 0, 0)),      # vis_proj -> (C,1)
            pl.BlockSpec((None, C, t_hw), lambda b, s: (b, 0, s)),   # boundary -> (C,tHW)
            pl.BlockSpec((None, C, t_hw), lambda b, s: (b, 0, s)),   # local    -> (C,tHW)
            pl.BlockSpec((None, C, t_hw), lambda b, s: (b, 0, s)),   # content  -> (C,tHW)
            pl.BlockSpec((None, 1, t_hw), lambda b, s: (b, 0, s)),   # mask     -> (1,tHW)
        ],
        out_specs=pl.BlockSpec((None, C, t_hw), lambda b, s: (b, 0, s)),
        compiler_params=pltpu.CompilerParams(
            dimension_semantics=("parallel", "parallel"),
            vmem_limit_bytes=VMEM_LIMIT),
        cost_estimate=cost,
    )(vis_proj, bmap, lmap, cmap, mask)

    if hw_pad != HW:
        out = out[:, :, :HW]
    return out.reshape(B, C, H, W)


# ----------------------------------------------------------------------------
# Pure-JAX reference for correctness checking.
# ----------------------------------------------------------------------------
def second_fuse_ref(boundary_map, local_map, content_map, map_mask, vis_h, params):
    vis_pool = jnp.mean(vis_h, axis=-1)                       # AvgPool1d(16,16)+squeeze
    vis_proj = vis_pool @ params["w_b2"].T + params["b_b2"]   # (B, C)
    vis_proj = vis_proj[:, :, None, None]                     # (B, C, 1, 1)
    gate_b2 = jax.nn.sigmoid(boundary_map * vis_proj)
    gate_b3 = jax.nn.sigmoid(gate_b2 * local_map)
    return gate_b3 * content_map * map_mask


if __name__ == "__main__":
    key = jax.random.PRNGKey(0)
    kB, kL, kC, kM, kV, kw, kb = jax.random.split(key, 7)

    B, H, W = 2, 16, 16

    boundary_map = jax.random.normal(kB, (B, C, H, W), dtype=jnp.float32)
    local_map = jax.random.normal(kL, (B, C, H, W), dtype=jnp.float32)
    content_map = jax.random.normal(kC, (B, C, H, W), dtype=jnp.float32)
    map_mask = (jax.random.uniform(kM, (B, 1, H, W)) > 0.25).astype(jnp.float32)
    vis_h = jax.random.normal(kV, (B, C, POOL_K), dtype=jnp.float32)

    bound = 1.0 / jnp.sqrt(jnp.float32(C))
    params = {
        "w_b2": jax.random.uniform(kw, (C, C), jnp.float32, -bound, bound),
        "b_b2": jax.random.uniform(kb, (C,), jnp.float32, -bound, bound),
    }

    ref = second_fuse_ref(boundary_map, local_map, content_map, map_mask,
                          vis_h, params)

    # f32 path: inputs streamed as-is, f32 output.  Tight tolerance.
    out = second_fuse_forward(boundary_map, local_map, content_map, map_mask,
                              vis_h, params)
    out = jax.block_until_ready(out)
    assert out.shape == (B, C, H, W), out.shape
    assert out.dtype == jnp.float32, out.dtype
    assert jnp.allclose(out, ref, rtol=1e-4, atol=1e-4), (
        float(jnp.max(jnp.abs(out - ref))))

    # bf16 path: only when the inputs ALREADY are bf16 (no wrapper converts);
    # output follows input dtype (halves the largest HBM stream).
    bm16 = boundary_map.astype(jnp.bfloat16)
    lm16 = local_map.astype(jnp.bfloat16)
    cm16 = content_map.astype(jnp.bfloat16)
    mk16 = map_mask.astype(jnp.bfloat16)
    out16 = second_fuse_forward(bm16, lm16, cm16, mk16, vis_h, params)
    out16 = jax.block_until_ready(out16)
    assert out16.shape == (B, C, H, W), out16.shape
    assert out16.dtype == jnp.bfloat16, out16.dtype
    assert jnp.allclose(out16.astype(jnp.float32), ref, rtol=5e-2, atol=5e-2), (
        float(jnp.max(jnp.abs(out16.astype(jnp.float32) - ref))))

    print("KERNEL_OK")
</pallas_src>

<mosaic_0001>
module attributes {stable_mosaic.version = 11 : i64} {
  func.func @fuse_kernel(%arg0: i32, %arg1: i32, %arg2: memref<1x512x1xf32, #tpu.memory_space<vmem>>, %arg3: memref<1x512x128xf32, #tpu.memory_space<vmem>>, %arg4: memref<1x512x128xf32, #tpu.memory_space<vmem>>, %arg5: memref<1x512x128xf32, #tpu.memory_space<vmem>>, %arg6: memref<1x1x128xf32, #tpu.memory_space<vmem>>, %arg7: memref<1x512x128xf32, #tpu.memory_space<vmem>>) attributes {dimension_semantics = [#tpu.dimension_semantics<parallel>, #tpu.dimension_semantics<parallel>], iteration_bounds = array<i64: 2, 2>, scalar_prefetch = 0 : i64, scratch_operands = 0 : i64, tpu.core_type = #tpu.core_type<tc>, window_params = [{transform_indices = @transform_0, window_bounds = array<i64: 1, 512, 1>}, {transform_indices = @transform_1, window_bounds = array<i64: 1, 512, 128>}, {transform_indices = @transform_2, window_bounds = array<i64: 1, 512, 128>}, {transform_indices = @transform_3, window_bounds = array<i64: 1, 512, 128>}, {transform_indices = @transform_4, window_bounds = array<i64: 1, 1, 128>}, {transform_indices = @transform_5, window_bounds = array<i64: 1, 512, 128>}]} {
    %c0 = arith.constant 0 : index
    %c0_0 = arith.constant 0 : index
    %c0_1 = arith.constant 0 : index
    %0 = vector.load %arg2[%c0, %c0_0, %c0_1] : memref<1x512x1xf32, #tpu.memory_space<vmem>>, vector<1x512x1xf32>
    %1 = vector.shape_cast %0 : vector<1x512x1xf32> to vector<512x1xf32>
    %c0_2 = arith.constant 0 : index
    %c0_3 = arith.constant 0 : index
    %c0_4 = arith.constant 0 : index
    %2 = vector.load %arg3[%c0_2, %c0_3, %c0_4] : memref<1x512x128xf32, #tpu.memory_space<vmem>>, vector<1x512x128xf32>
    %3 = vector.shape_cast %2 : vector<1x512x128xf32> to vector<512x128xf32>
    %c0_5 = arith.constant 0 : index
    %c0_6 = arith.constant 0 : index
    %c0_7 = arith.constant 0 : index
    %4 = vector.load %arg4[%c0_5, %c0_6, %c0_7] : memref<1x512x128xf32, #tpu.memory_space<vmem>>, vector<1x512x128xf32>
    %5 = vector.shape_cast %4 : vector<1x512x128xf32> to vector<512x128xf32>
    %c0_8 = arith.constant 0 : index
    %c0_9 = arith.constant 0 : index
    %c0_10 = arith.constant 0 : index
    %6 = vector.load %arg5[%c0_8, %c0_9, %c0_10] : memref<1x512x128xf32, #tpu.memory_space<vmem>>, vector<1x512x128xf32>
    %7 = vector.shape_cast %6 : vector<1x512x128xf32> to vector<512x128xf32>
    %c0_11 = arith.constant 0 : index
    %c0_12 = arith.constant 0 : index
    %c0_13 = arith.constant 0 : index
    %8 = vector.load %arg6[%c0_11, %c0_12, %c0_13] : memref<1x1x128xf32, #tpu.memory_space<vmem>>, vector<1x1x128xf32>
    %9 = vector.shape_cast %8 : vector<1x1x128xf32> to vector<1x128xf32>
    %10 = vector.broadcast %1 : vector<512x1xf32> to vector<512x128xf32>
    %11 = arith.mulf %3, %10 : vector<512x128xf32>
    %cst = arith.constant 5.000000e-01 : f32
    %12 = vector.broadcast %cst : f32 to vector<512x128xf32>
    %13 = arith.mulf %12, %11 : vector<512x128xf32>
    %14 = math.tanh %13 : vector<512x128xf32>
    %cst_14 = arith.constant 1.000000e+00 : f32
    %15 = vector.broadcast %cst_14 : f32 to vector<512x128xf32>
    %16 = arith.addf %14, %15 : vector<512x128xf32>
    %cst_15 = arith.constant 5.000000e-01 : f32
    %17 = vector.broadcast %cst_15 : f32 to vector<512x128xf32>
    %18 = arith.mulf %17, %16 : vector<512x128xf32>
    %19 = arith.mulf %18, %5 : vector<512x128xf32>
    %cst_16 = arith.constant 5.000000e-01 : f32
    %20 = vector.broadcast %cst_16 : f32 to vector<512x128xf32>
    %21 = arith.mulf %20, %19 : vector<512x128xf32>
    %22 = math.tanh %21 : vector<512x128xf32>
    %cst_17 = arith.constant 1.000000e+00 : f32
    %23 = vector.broadcast %cst_17 : f32 to vector<512x128xf32>
    %24 = arith.addf %22, %23 : vector<512x128xf32>
    %cst_18 = arith.constant 5.000000e-01 : f32
    %25 = vector.broadcast %cst_18 : f32 to vector<512x128xf32>
    %26 = arith.mulf %25, %24 : vector<512x128xf32>
    %27 = arith.mulf %26, %7 : vector<512x128xf32>
    %28 = vector.broadcast %9 : vector<1x128xf32> to vector<512x128xf32>
    %29 = arith.mulf %27, %28 : vector<512x128xf32>
    %c0_19 = arith.constant 0 : index
    %c0_20 = arith.constant 0 : index
    %c0_21 = arith.constant 0 : index
    %30 = vector.load %arg7[%c0_19, %c0_20, %c0_21] : memref<1x512x128xf32, #tpu.memory_space<vmem>>, vector<1x512x128xf32>
    %31 = vector.shape_cast %30 : vector<1x512x128xf32> to vector<512x128xf32>
    %32 = vector.shape_cast %29 : vector<512x128xf32> to vector<1x512x128xf32>
    tpu.vector_store %arg7[%c0_19, %c0_20, %c0_21], %32 {strides = array<i32>} : memref<1x512x128xf32, #tpu.memory_space<vmem>>, vector<1x512x128xf32>,
    return
  }
  func.func @transform_0(%arg0: i32, %arg1: i32) -> (i32, i32, i32) {
    %c0_i32 = arith.constant 0 : i32
    %c0_i32_0 = arith.constant 0 : i32
    %c0_i32_1 = arith.constant 0 : i32
    return %arg0, %c0_i32, %c0_i32_0 : i32, i32, i32
  }
  func.func @transform_1(%arg0: i32, %arg1: i32) -> (i32, i32, i32) {
    %c0_i32 = arith.constant 0 : i32
    %c0_i32_0 = arith.constant 0 : i32
    return %arg0, %c0_i32, %arg1 : i32, i32, i32
  }
  func.func @transform_2(%arg0: i32, %arg1: i32) -> (i32, i32, i32) {
    %c0_i32 = arith.constant 0 : i32
    %c0_i32_0 = arith.constant 0 : i32
    return %arg0, %c0_i32, %arg1 : i32, i32, i32
  }
  func.func @transform_3(%arg0: i32, %arg1: i32) -> (i32, i32, i32) {
    %c0_i32 = arith.constant 0 : i32
    %c0_i32_0 = arith.constant 0 : i32
    return %arg0, %c0_i32, %arg1 : i32, i32, i32
  }
  func.func @transform_4(%arg0: i32, %arg1: i32) -> (i32, i32, i32) {
    %c0_i32 = arith.constant 0 : i32
    %c0_i32_0 = arith.constant 0 : i32
    return %arg0, %c0_i32, %arg1 : i32, i32, i32
  }
  func.func @transform_5(%arg0: i32, %arg1: i32) -> (i32, i32, i32) {
    %c0_i32 = arith.constant 0 : i32
    %c0_i32_0 = arith.constant 0 : i32
    return %arg0, %c0_i32, %arg1 : i32, i32, i32
  }
}

</mosaic_0001>

<bundles_post_ra>
// kernel: tpu_custom_call.1
= control target key start
LH: loop header
LB: loop body
LE: loop exit
PB: predicated region body
PF: predicated region fallthrough
CT: control target
= control target key end

     0   :  { %s3428_s0 = inlined_call_operand.vmem [shape: f32[2,512,1], index: 0, kind: input, shape index: {}]   ;;  %s3429_s1 = inlined_call_operand.hbm [shape: f32[2,512,256], index: 1, kind: input, shape index: {}]   ;;  %s3430_s2 = inlined_call_operand.hbm [shape: f32[2,512,256], index: 2, kind: input, shape index: {}]   ;;  %s3431_s3 = inlined_call_operand.hbm [shape: f32[2,512,256], index: 3, kind: input, shape index: {}]   ;;  %s3432_s4 = inlined_call_operand.vmem [shape: f32[2,1,256], index: 4, kind: input, shape index: {}]   ;;  %s3433_s5 = inlined_call_operand.hbm [shape: f32[2,512,256], index: 5, kind: output, shape index: {}]  }
   0x1   :  { %3449 = sst [smem:[#allocation19_spill]] %s3429_s1 }
   0x2   :  { %3450 = sst [smem:[#allocation20_spill]] %s3430_s2 }
   0x3   :  { %10 = vsyncpa [#allocation3], 0 }
   0x4   :  { %12 = vsyncpa [#allocation3 + $0x1], 0 }
   0x5   :  { %13 = vsyncpa [#allocation6], 0 }
   0x6   :  { %15 = vsyncpa [#allocation6 + $0x1], 0 }
   0x7   :  { %16 = vsyncpa [#allocation4], 0 }
   0x8   :  { %18 = vsyncpa [#allocation4 + $0x1], 0  ;;  %s2600_s18 = smov 0   ;;  %s2602_s19 = smov 0  }
   0x9   :  { %s2604_s20 = smov 0   ;;  %s2606_s21 = smov 0  }
   0xa   :  { %s2608_s22 = smov 0   ;;  %s2610_s23 = smov 0  }
   0xb   :  { %s2612_s24 = smov 0   ;;  %s2614_s25 = smov 0  }
   0xc LB: > { %3451 = sst [smem:[#allocation12_spill]] %s2537_s20  ;;  %s2641_s26 = sadd.s32 4294967295, %s2557_s25   ;;  %s2557_s25 = sphi %s2614_s25, %s24_s25   ;;  %s2553_s24 = sphi %s2612_s24, %s3482_s24   ;;  %s2549_s23 = sphi %s2610_s23, %s3481_s23   ;;  %s2545_s22 = sphi %s2608_s22, %s3480_s22   ;;  %s2541_s21 = sphi %s2606_s21, %s3485_s21   ;;  %s2537_s20 = sphi %s2604_s20, %s3478_s20   ;;  %s2533_s19 = sphi %s2602_s19, %s3484_s19   ;;  %s2529_s18 = sphi %s2600_s18, %s3483_s18  }
   0xd   : > { %3452 = sst [smem:[#allocation13_spill]] %s2549_s23  ;;  %s1984_s27 = sadd.s32 4294967294, %s2557_s25  }
   0xe   : > { %3453 = sst [smem:[#allocation14_spill]] %s2553_s24  ;;  %s33_s28 = sadd.s32 1, %s2549_s23 }
   0xf   : > { %s36_s29 = sadd.s32 1, %s2553_s24  ;;  %p34_p0 = scmp.ge.s32.totalorder %s33_s28, 2 }
  0x10   : > { %s71_s30 = sadd.s32 1, %s2537_s20  ;;  %p78_p1 = scmp.ne.s32.totalorder %s2537_s20, %s2533_s19 }
  0x11   : > { %p79_p2 = scmp.eq.s32.totalorder %s2557_s25, 0  ;;  %s3487_s28 = smov (%p34_p0, %s33_s28), 0 }
  0x12   : > { %3454 = sst [smem:[#allocation15_spill]] %s3487_s28  ;;  %s3489_s29 = smov (!%p34_p0, %s36_s29), %s2553_s24 }
  0x13   : > { %s67_s6 = ssub.s32 %s2549_s23, %s3487_s28  ;;  %p2655_p3 = por %p79_p2, %p78_p1 }
  0x14   : > { %p38_p4 = scmp.ge.s32.totalorder %s3489_s29, 2  ;;  %p84_p5 = scmp.ne.s32.totalorder %s2533_s19, %s2529_s18 }
  0x15   : > { %p85_p6 = scmp.eq.s32.totalorder %s2641_s26, 0  ;;  %p194_p7 = scmp.eq.s32.totalorder %s2641_s26, 3 }
  0x16   : > { %s3491_s29 = smov (%p38_p4, %s3489_s29), 0  ;;  %p200_p10 = scmp.eq.s32.totalorder %s1984_s27, 3 }
  0x17   : > { %3456 = sst [smem:[#allocation16_spill]] %s3491_s29  ;;  %p2665_p8 = por %p85_p6, %p84_p5 }
  0x18   : > { %p2669_p9 = por %p194_p7, %p78_p1  ;;  %s66_s10 = ssub.s32 %s2553_s24, %s3491_s29 }
  0x19   : > { %s3457_s8 = scalar_select %p2665_p8, 1, 0 }
  0x1a   : > { %s3458_s9 = scalar_select %p2669_p9, 1, 0 }
  0x1b   : > { %s68_s11 = sor.u32 %s67_s6, %s66_s10  ;;  %p2675_p12 = por %p200_p10, %p84_p5 }
  0x1c   : > { %p69_p11 = scmp.eq.s32.totalorder %s68_s11, 0  ;;  %p2033_p13 = scmp.lt.s32.totalorder %s2557_s25, 4 }
  0x1d   : > { %s3459_s12 = scalar_select %p2675_p12, 1, 0 }
  0x1e   : > { %s3435_s13 = sand.u32 1, %s2537_s20   ;;  %s1988_s16 = sshll.u32 %s2553_s24, 7 }
  0x1f   : > { %3460 = sst [smem:[#allocation17_spill]] %s3459_s12  ;;  %s2686_s15 = sshll.u32 %s3435_s13, 9 }
  0x20   : > { %s2682_s14 = scalar_select %p69_p11, %s2537_s20, %s71_s30  }
  0x21   : > { %s237_s17 = sadd.s32 %s2549_s23, %s1988_s16  ;;  %p2692_p0 = pnand %p2033_p13, %p2655_p3 }
  0x22   : > { %3461 = sst [smem:[#allocation18_spill]] %s2682_s14  ;;  %s2696_s6 = sshll.u32 %s237_s17, 7 }
  0x23   : > { %s250_s10 = sand.u32 1, %s2557_s25   ;;  %s3463_s2 = sld [smem:[#allocation20_spill]] }
  0x24   : > { %s254_s16 = scalar_lea.vmem [#allocation5], %s2686_s15  ;;  %s2709_s13 = scalar_lea.sflag [#allocation6], %s250_s10 }
  0x25   : > { %s262_s7 = sshll.u32 %s254_s16, 4  ;;  %p2715_p3 = pneg %p2692_p0  ;;  %s2706_s7 = int_to_ptr.vmem [resolvable:$true] %s262_s7 }
  0x29   : > { %s2703_s30 = scalar_lea.hbm %s3463_s2, %s2696_s6  ;;  %s2370_s16 = scalar_lea.hbm %s3463_s2, 32768 }
  0x2a   : > { %s2365_s17 = scalar_lea.hbm %s2703_s30, 8192  ;;  %p2371_p6 = scmp.lt.u32.totalorder %s2703_s30, %s3463_s2 }
  0x2b   : > { %p2366_p2 = scmp.ne.s32.totalorder %s2703_s30, %s2365_s17  ;;  %p2372_p7 = scmp.lt.u32.totalorder %s2370_s16, %s2365_s17 }
  0x2c   : > { %p2374_p11 = scmp.lt.u32.totalorder %s2365_s17, %s2703_s30 }
  0x2d   : > { %p2368_p4 = pnand %p2715_p3, %p2366_p2  ;;  %p2373_p10 = por %p2372_p7, %p2371_p6 }
  0x2f   : > { %p2369_p5 = pneg %p2368_p4  ;;  %p2375_p13 = por %p2374_p11, %p2373_p10 }
  0x31   : > { %p2376_p1 = pnand %p2375_p13, %p2369_p5 }
  0x33   : > { %2379 = shalt.err (!%p2376_p1)
}
  0x34   : > { %s2380_s10 = scalar_lea.vmem %s2706_s7, 8192  ;;  %s2559_s29 = smov [#allocation5]  }
  0x35   : > { %p2381_p2 = scmp.ne.s32.totalorder %s2706_s7, %s2380_s10  ;;  %s2385_s11 = sshll.u32 %s2559_s29, 4  ;;  %s2386_s11 = int_to_ptr.vmem [resolvable:$false] %s2385_s11 }
  0x36   : > { %s2387_s23 = scalar_lea.vmem %s2386_s11, 16384  ;;  %p2388_p9 = scmp.lt.s32.totalorder %s2706_s7, %s2386_s11 }
  0x37   : > { %p2383_p4 = pnand %p2381_p2, %p2715_p3  ;;  %p2389_p8 = scmp.lt.s32.totalorder %s2387_s23, %s2380_s10 }
  0x39   : > { %p2384_p12 = pneg %p2383_p4  ;;  %p2390_p6 = por %p2389_p8, %p2388_p9 }
  0x3b   : > { %p2391_p7 = pnand %p2390_p6, %p2384_p12 }
  0x3d   : > { %2394 = shalt.err (!%p2391_p7)
}
  0x3e   : > { %s3441_s24 = smov 256   ;;  %s3443_s17 = smov 128  }
  0x3f   : > { %s3445_s16 = smov 8   ;;  %p302_p8 = scmp.lt.s32.totalorder %s2557_s25, 5 }
  0x40   : > { %2025 = dma.hbm_to_vmem [thread:$0]  (!%p2692_p0), %s2703_s30, 8192, %s2706_s7, %s2709_s13, %s3441_s24, %s3443_s17, %s3445_s16  }
  0x41   : > { %p3465_p9 = scmp.ge.s32.totalorder %s2557_s25, 1  ;;  %s3467_s1 = sld [smem:[#allocation19_spill]] }
  0x42   : > { %s232_s2 = scalar_lea.vmem [#allocation2], %s2686_s15  ;;  %s3468_s30 = sand.u32 1, %s2537_s20  }
  0x43   : > { %p2745_p12 = pnand %p3465_p9, %p302_p8  ;;  %s240_s14 = sshll.u32 %s232_s2, 4  ;;  %s2756_s14 = int_to_ptr.vmem [resolvable:$true] %s240_s14 }
  0x44   : > { %s2760_s7 = scalar_lea.sflag [#allocation3], %s3468_s30 }
  0x45   : > { %s3466_s10 = scalar_select %p2745_p12, 1, 0 }
  0x47   : > { %s2753_s23 = scalar_lea.hbm %s3467_s1, %s2696_s6  ;;  %s2400_s11 = scalar_lea.hbm %s3467_s1, 32768 }
  0x48   : > { %s2395_s24 = scalar_lea.hbm %s2753_s23, 8192  ;;  %p2401_p11 = scmp.lt.u32.totalorder %s2753_s23, %s3467_s1 }
  0x49   : > { %p2396_p1 = scmp.ne.s32.totalorder %s2753_s23, %s2395_s24  ;;  %p2402_p13 = scmp.lt.u32.totalorder %s2400_s11, %s2395_s24 }
  0x4a   : > { %p2404_p4 = scmp.lt.u32.totalorder %s2395_s24, %s2753_s23 }
  0x4b   : > { %p2398_p5 = pnand %p2396_p1, %p2715_p3  ;;  %p2403_p2 = por %p2402_p13, %p2401_p11 }
  0x4d   : > { %p2399_p10 = pneg %p2398_p5  ;;  %p2405_p6 = por %p2404_p4, %p2403_p2 }
  0x4f   : > { %p2406_p7 = pnand %p2405_p6, %p2399_p10 }
  0x51   : > { %2409 = shalt.err (!%p2406_p7)
}
  0x52   : > { %s2410_s2 = scalar_lea.vmem %s2756_s14, 8192  ;;  %s2563_s17 = smov [#allocation2]  }
  0x53   : > { %p2411_p8 = scmp.ne.s32.totalorder %s2756_s14, %s2410_s2  ;;  %s2415_s30 = sshll.u32 %s2563_s17, 4  ;;  %s2416_s30 = int_to_ptr.vmem [resolvable:$false] %s2415_s30 }
  0x54   : > { %s2417_s12 = scalar_lea.vmem %s2416_s30, 16384  ;;  %p2418_p5 = scmp.lt.s32.totalorder %s2756_s14, %s2416_s30 }
  0x55   : > { %p2413_p9 = pnand %p2411_p8, %p2715_p3  ;;  %p2419_p12 = scmp.lt.s32.totalorder %s2417_s12, %s2410_s2 }
  0x57   : > { %p2414_p1 = pneg %p2413_p9  ;;  %p2420_p11 = por %p2419_p12, %p2418_p5 }
  0x59   : > { %p2421_p13 = pnand %p2420_p11, %p2414_p1 }
  0x5b   : > { %2424 = shalt.err (!%p2421_p13)
}
  0x5c   : > { %s3469_s24 = smov 8   ;;  %s3470_s16 = smov 128  }
  0x5d   : > { %s3471_s29 = smov 256   ;;  %s2791_s30 = scalar_lea.hbm %s3431_s3, %s2696_s6 }
  0x5e   : > { %2022 = dma.hbm_to_vmem [thread:$0]  (!%p2692_p0), %s2753_s23, 8192, %s2756_s14, %s2760_s7, %s3471_s29, %s3470_s16, %s3469_s24  }
  0x5f   : > { %s276_s2 = scalar_lea.vmem [#allocation7], %s2686_s15  ;;  %s2425_s1 = scalar_lea.hbm %s2791_s30, 8192 }
  0x60   : > { %s284_s12 = sshll.u32 %s276_s2, 4  ;;  %p2426_p12 = scmp.ne.s32.totalorder %s2791_s30, %s2425_s1  ;;  %s2794_s12 = int_to_ptr.vmem [resolvable:$true] %s284_s12 }
  0x61   : > { %s2430_s23 = scalar_lea.hbm %s3431_s3, 32768  ;;  %p2431_p4 = scmp.lt.u32.totalorder %s2791_s30, %s3431_s3 }
  0x62   : > { %p2428_p10 = pnand %p2426_p12, %p2715_p3  ;;  %p2432_p6 = scmp.lt.u32.totalorder %s2430_s23, %s2425_s1 }
  0x63   : > { %p2434_p8 = scmp.lt.u32.totalorder %s2425_s1, %s2791_s30 }
  0x64   : > { %p2429_p2 = pneg %p2428_p10  ;;  %p2433_p7 = por %p2432_p6, %p2431_p4 }
  0x66   : > { %p2435_p9 = por %p2434_p8, %p2433_p7 }
  0x68   : > { %p2436_p1 = pnand %p2435_p9, %p2429_p2 }
  0x6a   : > { %2439 = shalt.err (!%p2436_p1)
}
  0x6b   : > { %s2440_s15 = scalar_lea.vmem %s2794_s12, 8192  ;;  %s2564_s20 = smov [#allocation7]  }
  0x6c   : > { %p2441_p5 = scmp.ne.s32.totalorder %s2794_s12, %s2440_s15  ;;  %s2445_s11 = sshll.u32 %s2564_s20, 4  ;;  %s2446_s11 = int_to_ptr.vmem [resolvable:$false] %s2445_s11 }
  0x6d   : > { %s2447_s17 = scalar_lea.vmem %s2446_s11, 16384  ;;  %p2448_p12 = scmp.lt.s32.totalorder %s2794_s12, %s2446_s11 }
  0x6e   : > { %p2443_p11 = pnand %p2441_p5, %p2715_p3  ;;  %p2449_p10 = scmp.lt.s32.totalorder %s2447_s17, %s2440_s15 }
  0x70   : > { %p2444_p13 = pneg %p2443_p11  ;;  %p2450_p4 = por %p2449_p10, %p2448_p12 }
  0x72   : > { %p2451_p6 = pnand %p2450_p4, %p2444_p13 }
  0x74   : > { %2454 = shalt.err (!%p2451_p6)
}
  0x75   : > { %2028 = dma.hbm_to_vmem [thread:$0]  (!%p2692_p0), %s2791_s30, 8192, %s2794_s12, %s2709_s13, %s3471_s29, %s3470_s16, %s3469_s24  }
  0x76   : > { %p3472_p3 = scmp.ne.s32.totalorder %s3466_s10, 0 }
  0x77   : > { %s2824_s1 = sand.u32 (!%p3472_p3), 1, %s2533_s19   ;;  %p3473_p2 = scmp.ne.s32.totalorder (!%p3472_p3), %s3457_s8, 0 }
  0x78   : > { %306 = sbr.rel (%p3472_p3) target bundleno = 502 (0x1f6), region = 40  ;;  %s2827_s28 = sshll.u32 (!%p3472_p3), %s2824_s1, 9 }
  0x79   : > { %s309_s27 = scalar_lea.sflag (!%p3472_p3), [#allocation3], %s2824_s1  ;;  %s2831_s2 = scalar_lea.vmem (!%p3472_p3), [#allocation2], %s2827_s28 }
  0x7f   : > { %2516 = dma.done.wait (%p3473_p2), %s309_s27, 8192  }
  0x80   : > { %2518 = vsyncadd (%p3473_p2), %s309_s27, 4294959104  ;;  %s317_s13 = sand.u32 1, %s2641_s26   ;;  %s2839_s24 = scalar_lea.vmem [#allocation5], %s2827_s28 }
  0x81   : > { %s318_s10 = scalar_lea.sflag [#allocation6], %s317_s13 }
  0x82   : > { %2520 = dma.done.wait (%p3473_p2), %s318_s10, 16384  }
  0x83   : > { %2522 = vsyncadd (%p3473_p2), %s318_s10, 4294950912  ;;  %p379_p0 = scmp.lt.s32.totalorder %s2545_s22, 1  ;;  %v2565_v0 = vmov 0   ;;  %p386_p7 = scmp.lt.s32.totalorder %s2541_s21, 1 }
  0x84   : > { %2107 = vset.pattern.permute.xlu1 %v2565_v0  ;;  %2106 = vset.pattern.permute.xlu0 %v2565_v0  ;;  %s2960_s20 = scalar_lea.vmem [#allocation7], %s2827_s28  ;;  %s2982_s11 = scalar_lea.vmem [#allocation8], %s2827_s28 }
  0x85   : > { %s2847_s16 = scalar_select %p379_p0, %s2545_s22, 1 }
  0x86   : > { %s387_s8 = scalar_select %p386_p7, %s2541_s21, 1 }
  0x87   : > { %s2010_s29 = sshll.u32 %s2847_s16, 9  ;;  %s2003_s14 = sshll.u32 %s2847_s16, 1 }
  0x88   : > { %s2853_s12 = scalar_lea.vmem %s3428_s0, %s2010_s29  ;;  %s389_s23 = sadd.s32 %s2003_s14, %s387_s8 }
  0x89   : > { %v393_v1 = vld [vmem:[%s2853_s12 + $0x10] sm:$0xff]  ;;  %v391_v2 = vld [vmem:[%s2853_s12] sm:$0xff]  ;;  %v394_v3 = vld [vmem:[%s2853_s12 + $0x18] sm:$0xff]  ;;  %s2957_s15 = scalar_lea.vmem %s3432_s4, %s389_s23  ;;  %s2006_s17 = sshll.u32 %s2545_s22, 7 }
  0x8a   : > { %660 = vperm.xlu1 %2107, %v393_v1   ;;  %650 = vperm.xlu0 %2106, %v391_v2   ;;  %v392_v4 = vld [vmem:[%s2853_s12 + $0x8] sm:$0xff]  ;;  %v395_v6 = vld [vmem:[%s2853_s12 + $0x20] sm:$0xff]  ;;  %v398_v7 = vld [vmem:[%s2853_s12 + $0x38] sm:$0xff]  ;;  %s1818_s22 = sadd.s32 %s2541_s21, %s2006_s17  ;;  %s1821_s28 = sshll.u32 %s2982_s11, 4  ;;  %s3364_s28 = int_to_ptr.vmem [resolvable:$true] %s1821_s28 }
  0x8b   : > { %v396_v5 = vld [vmem:[%s2853_s12 + $0x28] sm:$0xff]  ;;  %v397_v8 = vld [vmem:[%s2853_s12 + $0x30] sm:$0xff]  ;;  %v399_v10 = vld [vmem:[%s2853_s12 + $0x40] sm:$0xff]  ;;  %s2007_s21 = sshll.u32 %s1818_s22, 7  ;;  %s1807_s10 = scalar_lea.sflag [#allocation4], %s2824_s1 }
  0x8c   : > { %v400_v9 = vld [vmem:[%s2853_s12 + $0x48] sm:$0xff]  ;;  %v402_v11 = vld [vmem:[%s2853_s12 + $0x58] sm:$0xff]  ;;  %v401_v12 = vld [vmem:[%s2853_s12 + $0x50] sm:$0xff]  ;;  %s3370_s13 = scalar_lea.hbm %s3433_s5, %s2007_s21  ;;  %p3474_p9 = scmp.ne.s32.totalorder %s3458_s9, 0 }
  0x8d   : > { %v404_v13 = vld [vmem:[%s2853_s12 + $0x68] sm:$0xff]  ;;  %v403_v14 = vld [vmem:[%s2853_s12 + $0x60] sm:$0xff]  ;;  %v406_v15 = vld [vmem:[%s2853_s12 + $0x78] sm:$0xff]  ;;  %s2566_s16 = smov [#allocation8]  }
  0x8e   : > { %665 = vperm.xlu1 %2107, %v394_v3   ;;  %655 = vperm.xlu0 %2106, %v392_v4   ;;  %v405_v16 = vld [vmem:[%s2853_s12 + $0x70] sm:$0xff]  ;;  %v408_v17 = vld [vmem:[%s2853_s12 + $0x88] sm:$0xff]  ;;  %v407_v18 = vld [vmem:[%s2853_s12 + $0x80] sm:$0xff]  ;;  %s2459_s29 = sshll.u32 %s2566_s16, 4  ;;  %s2460_s29 = int_to_ptr.vmem [resolvable:$false] %s2459_s29 }
  0x8f   : > { %v410_v19 = vld [vmem:[%s2853_s12 + $0x98] sm:$0xff]  ;;  %v409_v20 = vld [vmem:[%s2853_s12 + $0x90] sm:$0xff]  ;;  %v412_v21 = vld [vmem:[%s2853_s12 + $0xa8] sm:$0xff]  ;;  %s2461_s30 = scalar_lea.vmem %s2460_s29, 16384  ;;  %p2462_p11 = scmp.lt.s32.totalorder %s3364_s28, %s2460_s29 }
  0x90   : > { %v411_v22 = vld [vmem:[%s2853_s12 + $0xa0] sm:$0xff]  ;;  %v414_v23 = vld [vmem:[%s2853_s12 + $0xb8] sm:$0xff]  ;;  %v413_v24 = vld [vmem:[%s2853_s12 + $0xb0] sm:$0xff] }
  0x91   : > { %v416_v25 = vld [vmem:[%s2853_s12 + $0xc8] sm:$0xff]  ;;  %v415_v26 = vld [vmem:[%s2853_s12 + $0xc0] sm:$0xff]  ;;  %v418_v27 = vld [vmem:[%s2853_s12 + $0xd8] sm:$0xff] }
  0x92   : > { %675 = vperm.xlu1 %2107, %v396_v5   ;;  %670 = vperm.xlu0 %2106, %v395_v6   ;;  %v417_v28 = vld [vmem:[%s2853_s12 + $0xd0] sm:$0xff]  ;;  %v420_v29 = vld [vmem:[%s2853_s12 + $0xe8] sm:$0xff]  ;;  %v419_v30 = vld [vmem:[%s2853_s12 + $0xe0] sm:$0xff] }
  0x93   : > { %v422_v31 = vld [vmem:[%s2853_s12 + $0xf8] sm:$0xff]  ;;  %v421_v32 = vld [vmem:[%s2853_s12 + $0xf0] sm:$0xff]  ;;  %v424_v33 = vld [vmem:[%s2853_s12 + $0x108] sm:$0xff] }
  0x94   : > { %v423_v34 = vld [vmem:[%s2853_s12 + $0x100] sm:$0xff]  ;;  %v426_v35 = vld [vmem:[%s2853_s12 + $0x118] sm:$0xff]  ;;  %v425_v36 = vld [vmem:[%s2853_s12 + $0x110] sm:$0xff] }
  0x95   : > { %v428_v37 = vld [vmem:[%s2853_s12 + $0x128] sm:$0xff]  ;;  %v427_v38 = vld [vmem:[%s2853_s12 + $0x120] sm:$0xff]  ;;  %v430_v39 = vld [vmem:[%s2853_s12 + $0x138] sm:$0xff] }
  0x96   : > { %685 = vperm.xlu1 %2107, %v398_v7   ;;  %680 = vperm.xlu0 %2106, %v397_v8   ;;  %v429_v40 = vld [vmem:[%s2853_s12 + $0x130] sm:$0xff]  ;;  %v432_v41 = vld [vmem:[%s2853_s12 + $0x148] sm:$0xff]  ;;  %v431_v42 = vld [vmem:[%s2853_s12 + $0x140] sm:$0xff] }
  0x97   : > { %v434_v43 = vld [vmem:[%s2853_s12 + $0x158] sm:$0xff]  ;;  %v433_v44 = vld [vmem:[%s2853_s12 + $0x150] sm:$0xff]  ;;  %v436_v45 = vld [vmem:[%s2853_s12 + $0x168] sm:$0xff] }
  0x98   : > { %v435_v46 = vld [vmem:[%s2853_s12 + $0x160] sm:$0xff]  ;;  %v438_v47 = vld [vmem:[%s2853_s12 + $0x178] sm:$0xff]  ;;  %v437_v48 = vld [vmem:[%s2853_s12 + $0x170] sm:$0xff] }
  0x99   : > { %v440_v49 = vld [vmem:[%s2853_s12 + $0x188] sm:$0xff]  ;;  %v439_v50 = vld [vmem:[%s2853_s12 + $0x180] sm:$0xff]  ;;  %v442_v51 = vld [vmem:[%s2853_s12 + $0x198] sm:$0xff] }
  0x9a   : > { %695 = vperm.xlu1 %2107, %v400_v9   ;;  %690 = vperm.xlu0 %2106, %v399_v10   ;;  %v441_v52 = vld [vmem:[%s2853_s12 + $0x190] sm:$0xff]  ;;  %v444_v53 = vld [vmem:[%s2853_s12 + $0x1a8] sm:$0xff]  ;;  %v443_v54 = vld [vmem:[%s2853_s12 + $0x1a0] sm:$0xff] }
  0x9b   : > { %v446_v55 = vld [vmem:[%s2853_s12 + $0x1b8] sm:$0xff]  ;;  %v445_v56 = vld [vmem:[%s2853_s12 + $0x1b0] sm:$0xff]  ;;  %v448_v57 = vld [vmem:[%s2853_s12 + $0x1c8] sm:$0xff] }
  0x9c   : > { %v447_v58 = vld [vmem:[%s2853_s12 + $0x1c0] sm:$0xff]  ;;  %v450_v59 = vld [vmem:[%s2853_s12 + $0x1d8] sm:$0xff]  ;;  %v449_v60 = vld [vmem:[%s2853_s12 + $0x1d0] sm:$0xff] }
  0x9d   : > { %v452_v61 = vld [vmem:[%s2853_s12 + $0x1e8] sm:$0xff]  ;;  %v451_v62 = vld [vmem:[%s2853_s12 + $0x1e0] sm:$0xff]  ;;  %v454_v63 = vld [vmem:[%s2853_s12 + $0x1f8] sm:$0xff] }
  0x9e   : > { %705 = vperm.xlu1 %2107, %v402_v11   ;;  %700 = vperm.xlu0 %2106, %v401_v12   ;;  %v453_v0 = vld [vmem:[%s2853_s12 + $0x1f0] sm:$0xff]  ;;  %v455_v2 = vld [vmem:[%s2831_s2] sm:$0xff]  ;;  %v458_v7 = vld [vmem:[%s2831_s2 + $0x18] sm:$0xff] }
  0x9f   : > { %v457_v1 = vld [vmem:[%s2831_s2 + $0x10] sm:$0xff]  ;;  %v456_v8 = vld [vmem:[%s2831_s2 + $0x8] sm:$0xff] }
  0xa2   : > { %715 = vperm.xlu1 %2107, %v404_v13   ;;  %710 = vperm.xlu0 %2106, %v403_v14  }
  0xa6   : > { %725 = vperm.xlu1 %2107, %v406_v15   ;;  %720 = vperm.xlu0 %2106, %v405_v16   ;;  %v460_v15 = vld [vmem:[%s2831_s2 + $0x28] sm:$0xff]  ;;  %v459_v16 = vld [vmem:[%s2831_s2 + $0x20] sm:$0xff] }
  0xaa   : > { %735 = vperm.xlu1 %2107, %v408_v17   ;;  %730 = vperm.xlu0 %2106, %v407_v18  }
  0xae   : > { %745 = vperm.xlu1 %2107, %v410_v19   ;;  %740 = vperm.xlu0 %2106, %v409_v20  }
  0xb2   : > { %755 = vperm.xlu1 %2107, %v412_v21   ;;  %750 = vperm.xlu0 %2106, %v411_v22  }
  0xb6   : > { %765 = vperm.xlu1 %2107, %v414_v23   ;;  %760 = vperm.xlu0 %2106, %v413_v24   ;;  %v462_v23 = vld [vmem:[%s2831_s2 + $0x38] sm:$0xff]  ;;  %v461_v24 = vld [vmem:[%s2831_s2 + $0x30] sm:$0xff] }
  0xba   : > { %775 = vperm.xlu1 %2107, %v416_v25   ;;  %770 = vperm.xlu0 %2106, %v415_v26  }
  0xbe   : > { %785 = vperm.xlu1 %2107, %v418_v27   ;;  %780 = vperm.xlu0 %2106, %v417_v28  }
  0xc2   : > { %795 = vperm.xlu1 %2107, %v420_v29   ;;  %790 = vperm.xlu0 %2106, %v419_v30  }
  0xc6   : > { %805 = vperm.xlu1 %2107, %v422_v31   ;;  %800 = vperm.xlu0 %2106, %v421_v32   ;;  %v464_v31 = vld [vmem:[%s2831_s2 + $0x48] sm:$0xff]  ;;  %v463_v32 = vld [vmem:[%s2831_s2 + $0x40] sm:$0xff] }
  0xca   : > { %815 = vperm.xlu1 %2107, %v424_v33   ;;  %810 = vperm.xlu0 %2106, %v423_v34  }
  0xce   : > { %825 = vperm.xlu1 %2107, %v426_v35   ;;  %820 = vperm.xlu0 %2106, %v425_v36  }
  0xd2   : > { %835 = vperm.xlu1 %2107, %v428_v37   ;;  %830 = vperm.xlu0 %2106, %v427_v38  }
  0xd6   : > { %845 = vperm.xlu1 %2107, %v430_v39   ;;  %840 = vperm.xlu0 %2106, %v429_v40   ;;  %v521_v40 = vld [vmem:[%s2839_s24 + $0x10] sm:$0xff] }
  0xda   : > { %855 = vperm.xlu1 %2107, %v432_v41   ;;  %850 = vperm.xlu0 %2106, %v431_v42  }
  0xde   : > { %865 = vperm.xlu1 %2107, %v434_v43   ;;  %860 = vperm.xlu0 %2106, %v433_v44  }
  0xe2   : > { %875 = vperm.xlu1 %2107, %v436_v45   ;;  %870 = vperm.xlu0 %2106, %v435_v46   ;;  %v519_v45 = vld [vmem:[%s2839_s24] sm:$0xff]  ;;  %v466_v46 = vld [vmem:[%s2831_s2 + $0x58] sm:$0xff] }
  0xe6   : > { %885 = vperm.xlu1 %2107, %v438_v47   ;;  %880 = vperm.xlu0 %2106, %v437_v48  }
  0xea   : > { %895 = vperm.xlu1 %2107, %v440_v49   ;;  %890 = vperm.xlu0 %2106, %v439_v50  }
  0xee   : > { %905 = vperm.xlu1 %2107, %v442_v51   ;;  %900 = vperm.xlu0 %2106, %v441_v52   ;;  %v465_v51 = vld [vmem:[%s2831_s2 + $0x50] sm:$0xff] }
  0xf2   : > { %915 = vperm.xlu1 %2107, %v444_v53   ;;  %910 = vperm.xlu0 %2106, %v443_v54  }
  0xf6   : > { %925 = vperm.xlu1 %2107, %v446_v55   ;;  %920 = vperm.xlu0 %2106, %v445_v56  }
  0xfa   : > { %935 = vperm.xlu1 %2107, %v448_v57   ;;  %930 = vperm.xlu0 %2106, %v447_v58   ;;  %v522_v58 = vld [vmem:[%s2839_s24 + $0x18] sm:$0xff] }
  0xfe   : > { %945 = vperm.xlu1 %2107, %v450_v59   ;;  %940 = vperm.xlu0 %2106, %v449_v60  }
 0x102   : > { %955 = vperm.xlu1 %2107, %v452_v61   ;;  %950 = vperm.xlu0 %2106, %v451_v62  }
 0x106   : > { %965 = vperm.xlu1 %2107, %v454_v63   ;;  %960 = vperm.xlu0 %2106, %v453_v0   ;;  %v520_v63 = vld [vmem:[%s2839_s24 + $0x8] sm:$0xff] }
 0x109   : > { %v661_v3 = vpop.permute.xlu1 %660  ;;  %v651_v4 = vpop.permute.xlu0 %650 }
 0x10a   : > { %v970_v5 = vmul.f32 %v661_v3, %v457_v1  ;;  %v968_v6 = vmul.f32 %v651_v4, %v455_v2  ;;  %v468_v1 = vld [vmem:[%s2831_s2 + $0x68] sm:$0xff] }
 0x10c   : > { %v1034_v9 = vmul.f32 0.5, %v970_v5  ;;  %v1032_v10 = vmul.f32 0.5, %v968_v6  ;;  %v467_v6 = vld [vmem:[%s2831_s2 + $0x60] sm:$0xff] }
 0x10d   : > { %v666_v11 = vpop.permute.xlu1 %665  ;;  %v656_v12 = vpop.permute.xlu0 %655 }
 0x10e   : > { %2108 = vtanh.f32 %v1034_v9  ;;  %v971_v13 = vmul.f32 %v666_v11, %v458_v7  ;;  %v969_v14 = vmul.f32 %v656_v12, %v456_v8 }
 0x10f   : > { %2110 = vtanh.f32 %v1032_v10 }
 0x110   : > { %v1035_v17 = vmul.f32 0.5, %v971_v13  ;;  %v1033_v18 = vmul.f32 0.5, %v969_v14  ;;  %v524_v14 = vld [vmem:[%s2839_s24 + $0x28] sm:$0xff] }
 0x111   : > { %v676_v19 = vpop.permute.xlu1 %675  ;;  %v671_v20 = vpop.permute.xlu0 %670 }
 0x112   : > { %2112 = vtanh.f32 %v1035_v17  ;;  %v973_v21 = vmul.f32 %v676_v19, %v460_v15  ;;  %v972_v22 = vmul.f32 %v671_v20, %v459_v16  ;;  %v523_v19 = vld [vmem:[%s2839_s24 + $0x20] sm:$0xff] }
 0x113   : > { %2114 = vtanh.f32 %v1033_v18 }
 0x114   : > { %v1037_v25 = vmul.f32 0.5, %v973_v21  ;;  %v1036_v26 = vmul.f32 0.5, %v972_v22  ;;  %v470_v21 = vld [vmem:[%s2831_s2 + $0x78] sm:$0xff] }
 0x115   : > { %v686_v27 = vpop.permute.xlu1 %685  ;;  %v681_v28 = vpop.permute.xlu0 %680 }
 0x116   : > { %2116 = vtanh.f32 %v1037_v25  ;;  %v975_v29 = vmul.f32 %v686_v27, %v462_v23  ;;  %v974_v30 = vmul.f32 %v681_v28, %v461_v24 }
 0x117   : > { %2118 = vtanh.f32 %v1036_v26  ;;  %v469_v26 = vld [vmem:[%s2831_s2 + $0x70] sm:$0xff] }
 0x118   : > { %v2109_v33 = vpop.eup %2108  ;;  %v1039_v34 = vmul.f32 0.5, %v975_v29  ;;  %v1038_v35 = vmul.f32 0.5, %v974_v30 }
 0x119   : > { %v2111_v36 = vpop.eup %2110  ;;  %v1162_v37 = vadd.f32 1.0, %v2109_v33  ;;  %v696_v38 = vpop.permute.xlu1 %695 }
 0x11a   : > { %v691_v39 = vpop.permute.xlu0 %690  ;;  %v1160_v41 = vadd.f32 1.0, %v2111_v36  ;;  %2120 = vtanh.f32 %v1039_v34  ;;  %v977_v42 = vmul.f32 %v696_v38, %v464_v31  ;;  %v526_v34 = vld [vmem:[%s2839_s24 + $0x38] sm:$0xff] }
 0x11b   : > { %v976_v43 = vmul.f32 %v691_v39, %v463_v32  ;;  %v1226_v44 = vmul.f32 0.5, %v1162_v37  ;;  %2122 = vtanh.f32 %v1038_v35  ;;  %v525_v39 = vld [vmem:[%s2839_s24 + $0x30] sm:$0xff] }
 0x11c   : > { %v2113_v47 = vpop.eup %2112  ;;  %v1224_v48 = vmul.f32 0.5, %v1160_v41  ;;  %v1041_v49 = vmul.f32 0.5, %v977_v42  ;;  %v472_v41 = vld [vmem:[%s2831_s2 + $0x88] sm:$0xff] }
 0x11d   : > { %v1040_v50 = vmul.f32 0.5, %v976_v43  ;;  %v2115_v52 = vpop.eup %2114  ;;  %v1290_v53 = vmul.f32 %v1226_v44, %v521_v40  ;;  %v1163_v54 = vadd.f32 1.0, %v2113_v47  ;;  %v706_v55 = vpop.permute.xlu1 %705 }
 0x11e   : > { %v701_v56 = vpop.permute.xlu0 %700  ;;  %v1288_v57 = vmul.f32 %v1224_v48, %v519_v45  ;;  %v1161_v59 = vadd.f32 1.0, %v2115_v52  ;;  %2124 = vtanh.f32 %v1041_v49  ;;  %v979_v60 = vmul.f32 %v706_v55, %v466_v46  ;;  %v471_v46 = vld [vmem:[%s2831_s2 + $0x80] sm:$0xff] }
 0x11f   : > { %v1354_v61 = vmul.f32 0.5, %v1290_v53  ;;  %v1227_v62 = vmul.f32 0.5, %v1163_v54  ;;  %2126 = vtanh.f32 %v1040_v50  ;;  %v978_v0 = vmul.f32 %v701_v56, %v465_v51  ;;  %v528_v54 = vld [vmem:[%s2839_s24 + $0x48] sm:$0xff] }
 0x120   : > { %v2117_v2 = vpop.eup %2116  ;;  %v1352_v3 = vmul.f32 0.5, %v1288_v57  ;;  %v1225_v4 = vmul.f32 0.5, %v1161_v59  ;;  %v1043_v5 = vmul.f32 0.5, %v979_v60  ;;  %v527_v60 = vld [vmem:[%s2839_s24 + $0x40] sm:$0xff] }
 0x121   : > { %v2119_v7 = vpop.eup %2118  ;;  %2128 = vtanh.f32 %v1354_v61  ;;  %v1291_v8 = vmul.f32 %v1227_v62, %v522_v58  ;;  %v1165_v9 = vadd.f32 1.0, %v2117_v2  ;;  %v1042_v10 = vmul.f32 0.5, %v978_v0  ;;  %v716_v11 = vpop.permute.xlu1 %715 }
 0x122   : > { %v711_v12 = vpop.permute.xlu0 %710  ;;  %2130 = vtanh.f32 %v1352_v3  ;;  %v1289_v13 = vmul.f32 %v1225_v4, %v520_v63  ;;  %v1164_v15 = vadd.f32 1.0, %v2119_v7  ;;  %v981_v16 = vmul.f32 %v716_v11, %v468_v1  ;;  %v585_v3 = vld [vmem:[%s2960_s20 + $0x10] sm:$0xff]  ;;  %v583_v11 = vld [vmem:[%s2960_s20] sm:$0xff] }
 0x123   : > { %v1355_v17 = vmul.f32 0.5, %v1291_v8  ;;  %v1229_v18 = vmul.f32 0.5, %v1165_v9  ;;  %2132 = vtanh.f32 %v1043_v5  ;;  %v980_v20 = vmul.f32 %v711_v12, %v467_v6 }
 0x124   : > { %v2121_v22 = vpop.eup %2120  ;;  %v1353_v23 = vmul.f32 0.5, %v1289_v13  ;;  %v1228_v24 = vmul.f32 0.5, %v1164_v15  ;;  %2134 = vtanh.f32 %v1042_v10  ;;  %v1045_v25 = vmul.f32 0.5, %v981_v16  ;;  %v2969_v15 = vld [vmem:[%s2957_s15] ss:$0 sm:$0xff] }
 0x125   : > { %v2123_v27 = vpop.eup %2122  ;;  %2136 = vtanh.f32 %v1355_v17  ;;  %v1293_v28 = vmul.f32 %v1229_v18, %v524_v14  ;;  %v1167_v29 = vadd.f32 1.0, %v2121_v22  ;;  %v1044_v30 = vmul.f32 0.5, %v980_v20  ;;  %v726_v31 = vpop.permute.xlu1 %725  ;;  %v530_v18 = vld [vmem:[%s2839_s24 + $0x58] sm:$0xff] }
 0x126   : > { %v721_v32 = vpop.permute.xlu0 %720  ;;  %2138 = vtanh.f32 %v1353_v23  ;;  %v1292_v33 = vmul.f32 %v1228_v24, %v523_v19  ;;  %v1166_v35 = vadd.f32 1.0, %v2123_v27  ;;  %v983_v36 = vmul.f32 %v726_v31, %v470_v21 }
 0x127   : > { %v1357_v37 = vmul.f32 0.5, %v1293_v28  ;;  %v1231_v38 = vmul.f32 0.5, %v1167_v29  ;;  %2140 = vtanh.f32 %v1045_v25  ;;  %v982_v40 = vmul.f32 %v721_v32, %v469_v26  ;;  %v529_v25 = vld [vmem:[%s2839_s24 + $0x50] sm:$0xff]  ;;  %v586_v28 = vld [vmem:[%s2960_s20 + $0x18] sm:$0xff] }
 0x128   : > { %v2125_v42 = vpop.eup %2124  ;;  %v1356_v43 = vmul.f32 0.5, %v1292_v33  ;;  %v1230_v44 = vmul.f32 0.5, %v1166_v35  ;;  %2142 = vtanh.f32 %v1044_v30  ;;  %v1047_v45 = vmul.f32 0.5, %v983_v36  ;;  %v584_v36 = vld [vmem:[%s2960_s20 + $0x8] sm:$0xff] }
 0x129   : > { %v2127_v47 = vpop.eup %2126  ;;  %2144 = vtanh.f32 %v1357_v37  ;;  %v1295_v48 = vmul.f32 %v1231_v38, %v526_v34  ;;  %v1169_v49 = vadd.f32 1.0, %v2125_v42  ;;  %v1046_v50 = vmul.f32 0.5, %v982_v40  ;;  %v736_v51 = vpop.permute.xlu1 %735 }
 0x12a   : > { %v731_v52 = vpop.permute.xlu0 %730  ;;  %2146 = vtanh.f32 %v1356_v43  ;;  %v1294_v53 = vmul.f32 %v1230_v44, %v525_v39  ;;  %v1168_v55 = vadd.f32 1.0, %v2127_v47  ;;  %v985_v56 = vmul.f32 %v736_v51, %v472_v41  ;;  %v532_v47 = vld [vmem:[%s2839_s24 + $0x68] sm:$0xff] }
 0x12b   : > { %v2129_v57 = vpop.eup %2128  ;;  %v1359_v58 = vmul.f32 0.5, %v1295_v48  ;;  %v1233_v59 = vmul.f32 0.5, %v1169_v49  ;;  %2148 = vtanh.f32 %v1047_v45  ;;  %v2952_v61 = vmul.f32 %v731_v52, %v471_v46  ;;  %v588_v51 = vld [vmem:[%s2960_s20 + $0x28] sm:$0xff] }
 0x12c   : > { %v2131_v62 = vpop.eup %2130  ;;  %v1482_v63 = vadd.f32 1.0, %v2129_v57  ;;  %v1358_v0 = vmul.f32 0.5, %v1294_v53  ;;  %v1232_v1 = vmul.f32 0.5, %v1168_v55  ;;  %2150 = vtanh.f32 %v1046_v50  ;;  %v531_v55 = vld [vmem:[%s2839_s24 + $0x60] sm:$0xff] }
 0x12d   : > { %v2133_v2 = vpop.eup %2132  ;;  %v1480_v4 = vadd.f32 1.0, %v2131_v62  ;;  %2152 = vtanh.f32 %v1359_v58  ;;  %v1297_v5 = vmul.f32 %v1233_v59, %v528_v54  ;;  %v1049_v6 = vmul.f32 0.5, %v985_v56  ;;  %v2963_v7 = vpop.permute.xlu1 %745  ;;  %v587_v62 = vld [vmem:[%s2960_s20 + $0x20] sm:$0xff] }
 0x12e   : > { %v2965_v8 = vpop.permute.xlu0 %740  ;;  %v2135_v9 = vpop.eup %2134  ;;  %v1546_v10 = vmul.f32 0.5, %v1482_v63  ;;  %2154 = vtanh.f32 %v1358_v0  ;;  %v1296_v12 = vmul.f32 %v1232_v1, %v527_v60  ;;  %v1171_v13 = vadd.f32 1.0, %v2133_v2 }
 0x12f   : > { %v2137_v14 = vpop.eup %2136  ;;  %v1544_v16 = vmul.f32 0.5, %v1480_v4  ;;  %v1361_v17 = vmul.f32 0.5, %v1297_v5  ;;  %v1170_v19 = vadd.f32 1.0, %v2135_v9  ;;  %2156 = vtanh.f32 %v1049_v6 }
 0x130   : > { %v2139_v20 = vpop.eup %2138  ;;  %v1610_v21 = vmul.f32 %v1546_v10, %v585_v3  ;;  %v1483_v22 = vadd.f32 1.0, %v2137_v14  ;;  %v1360_v23 = vmul.f32 0.5, %v1296_v12  ;;  %v1235_v24 = vmul.f32 0.5, %v1171_v13  ;;  %v590_v13 = vld [vmem:[%s2960_s20 + $0x38] sm:$0xff] }
 0x131   : > { %v2141_v26 = vpop.eup %2140  ;;  %v1608_v27 = vmul.f32 %v1544_v16, %v583_v11  ;;  %v1481_v29 = vadd.f32 1.0, %v2139_v20  ;;  %2158 = vtanh.f32 %v1361_v17  ;;  %v1234_v30 = vmul.f32 0.5, %v1170_v19  ;;  %v2974_v31 = vpop.permute.xlu1 %755  ;;  %v534_v17 = vld [vmem:[%s2839_s24 + $0x78] sm:$0xff] }
 0x132   : > { %v2976_v32 = vpop.permute.xlu0 %750  ;;  %v2143_v33 = vpop.eup %2142  ;;  %v1680_v34 = vmul.f32 %v2969_v15, %v1610_v21  ;;  %v1547_v35 = vmul.f32 0.5, %v1483_v22  ;;  %2160 = vtanh.f32 %v1360_v23  ;;  %v1299_v37 = vmul.f32 %v1235_v24, %v530_v18  ;;  %v589_v21 = vld [vmem:[%s2960_s20 + $0x30] sm:$0xff] }
 0x133   : > { %v2145_v38 = vpop.eup %2144  ;;  %v1678_v39 = vmul.f32 %v2969_v15, %v1608_v27  ;;  %v1545_v40 = vmul.f32 0.5, %v1481_v29  ;;  %v1298_v41 = vmul.f32 %v1234_v30, %v529_v25  ;;  %v1173_v42 = vadd.f32 1.0, %v2141_v26  ;;  %v533_v24 = vld [vmem:[%s2839_s24 + $0x70] sm:$0xff] }
 0x134   : > { %v2147_v43 = vpop.eup %2146  ;;  %1744 = vst [vmem:[%s2982_s11 + $0x10] sm:$0xff] %v1680_v34  ;;  %v1611_v44 = vmul.f32 %v1547_v35, %v586_v28  ;;  %v1485_v45 = vadd.f32 1.0, %v2145_v38  ;;  %v1363_v46 = vmul.f32 0.5, %v1299_v37  ;;  %v1172_v48 = vadd.f32 1.0, %v2143_v33  ;;  %v592_v38 = vld [vmem:[%s2960_s20 + $0x48] sm:$0xff] }
 0x135   : > { %v2149_v49 = vpop.eup %2148  ;;  %1742 = vst [vmem:[%s2982_s11] sm:$0xff] %v1678_v39  ;;  %v1609_v50 = vmul.f32 %v1545_v40, %v584_v36  ;;  %v1484_v52 = vadd.f32 1.0, %v2147_v43  ;;  %v1362_v53 = vmul.f32 0.5, %v1298_v41  ;;  %v1237_v54 = vmul.f32 0.5, %v1173_v42  ;;  %v2989_v56 = vpop.permute.xlu1 %765  ;;  %v474_v42 = vld [vmem:[%s2831_s2 + $0x98] sm:$0xff]  ;;  %v473_v43 = vld [vmem:[%s2831_s2 + $0x90] sm:$0xff] }
 0x136   : > { %v2991_v57 = vpop.permute.xlu0 %760  ;;  %v2151_v58 = vpop.eup %2150  ;;  %v1681_v59 = vmul.f32 %v2969_v15, %v1611_v44  ;;  %v1549_v60 = vmul.f32 0.5, %v1485_v45  ;;  %2162 = vtanh.f32 %v1363_v46  ;;  %v1236_v63 = vmul.f32 0.5, %v1172_v48  ;;  %v591_v46 = vld [vmem:[%s2960_s20 + $0x40] sm:$0xff]  ;;  %v536_v48 = vld [vmem:[%s2839_s24 + $0x88] sm:$0xff] }
 0x137   : > { %v2153_v0 = vpop.eup %2152  ;;  %v1679_v1 = vmul.f32 %v2969_v15, %v1609_v50  ;;  %v1548_v2 = vmul.f32 0.5, %v1484_v52  ;;  %2164 = vtanh.f32 %v1362_v53  ;;  %v1301_v3 = vmul.f32 %v1237_v54, %v532_v47 }
 0x138   : > { %v2155_v4 = vpop.eup %2154  ;;  %1745 = vst [vmem:[%s2982_s11 + $0x18] sm:$0xff] %v1681_v59  ;;  %v1613_v5 = vmul.f32 %v1549_v60, %v588_v51  ;;  %v1487_v6 = vadd.f32 1.0, %v2153_v0  ;;  %v1300_v9 = vmul.f32 %v1236_v63, %v531_v55  ;;  %v1175_v10 = vadd.f32 1.0, %v2149_v49 }
 0x139   : > { %v2157_v11 = vpop.eup %2156  ;;  %1743 = vst [vmem:[%s2982_s11 + $0x8] sm:$0xff] %v1679_v1  ;;  %v1612_v12 = vmul.f32 %v1548_v2, %v587_v62  ;;  %v1486_v14 = vadd.f32 1.0, %v2155_v4  ;;  %v1365_v16 = vmul.f32 0.5, %v1301_v3  ;;  %v1174_v18 = vadd.f32 1.0, %v2151_v58  ;;  %v3003_v25 = vpop.permute.xlu1 %775  ;;  %v476_v1 = vld [vmem:[%s2831_s2 + $0xa8] sm:$0xff]  ;;  %v475_v2 = vld [vmem:[%s2831_s2 + $0xa0] sm:$0xff] }
 0x13a   : > { %v1683_v19 = vmul.f32 %v2969_v15, %v1613_v5  ;;  %v1551_v20 = vmul.f32 0.5, %v1487_v6  ;;  %v1364_v22 = vmul.f32 0.5, %v1300_v9  ;;  %v1239_v23 = vmul.f32 0.5, %v1175_v10  ;;  %v3006_v30 = vpop.permute.xlu0 %770  ;;  %v478_v6 = vld [vmem:[%s2831_s2 + $0xb8] sm:$0xff]  ;;  %v477_v9 = vld [vmem:[%s2831_s2 + $0xb0] sm:$0xff] }
 0x13b   : > { %v2159_v26 = vpop.eup %2158  ;;  %v1682_v27 = vmul.f32 %v2969_v15, %v1612_v12  ;;  %v1550_v28 = vmul.f32 0.5, %v1486_v14  ;;  %2166 = vtanh.f32 %v1365_v16  ;;  %v1238_v29 = vmul.f32 0.5, %v1174_v18  ;;  %v593_v12 = vld [vmem:[%s2960_s20 + $0x50] sm:$0xff] }
 0x13c   : > { %v2161_v33 = vpop.eup %2160  ;;  %1747 = vst [vmem:[%s2982_s11 + $0x28] sm:$0xff] %v1683_v19  ;;  %v1615_v34 = vmul.f32 %v1551_v20, %v590_v13  ;;  %v1489_v35 = vadd.f32 1.0, %v2159_v26  ;;  %2168 = vtanh.f32 %v1364_v22  ;;  %v1303_v36 = vmul.f32 %v1239_v23, %v534_v17 }
 0x13d   : > { %1746 = vst [vmem:[%s2982_s11 + $0x20] sm:$0xff] %v1682_v27  ;;  %v1614_v37 = vmul.f32 %v1550_v28, %v589_v21  ;;  %v1488_v39 = vadd.f32 1.0, %v2161_v33  ;;  %v1302_v40 = vmul.f32 %v1238_v29, %v533_v24  ;;  %v1177_v41 = vadd.f32 1.0, %v2157_v11  ;;  %v3021_v60 = vpop.permute.xlu1 %785  ;;  %v596_v33 = vld [vmem:[%s2960_s20 + $0x68] sm:$0xff] }
 0x13e   : > { %v1685_v44 = vmul.f32 %v2969_v15, %v1615_v34  ;;  %v1553_v45 = vmul.f32 0.5, %v1489_v35  ;;  %v1367_v47 = vmul.f32 0.5, %v1303_v36  ;;  %v1048_v49 = vmul.f32 0.5, %v2952_v61  ;;  %v781_v3 = vpop.permute.xlu0 %780  ;;  %v482_v36 = vld [vmem:[%s2831_s2 + $0xd8] sm:$0xff] }
 0x13f   : > { %v1684_v50 = vmul.f32 %v2969_v15, %v1614_v37  ;;  %v1552_v51 = vmul.f32 0.5, %v1488_v39  ;;  %v1366_v52 = vmul.f32 0.5, %v1302_v40  ;;  %v1241_v53 = vmul.f32 0.5, %v1177_v41  ;;  %v481_v37 = vld [vmem:[%s2831_s2 + $0xd0] sm:$0xff]  ;;  %v595_v40 = vld [vmem:[%s2960_s20 + $0x60] sm:$0xff] }
 0x140   : > { %v2163_v54 = vpop.eup %2162  ;;  %1749 = vst [vmem:[%s2982_s11 + $0x38] sm:$0xff] %v1685_v44  ;;  %v1617_v55 = vmul.f32 %v1553_v45, %v592_v38  ;;  %2170 = vtanh.f32 %v1367_v47  ;;  %v987_v58 = vmul.f32 %v2963_v7, %v474_v42  ;;  %v986_v59 = vmul.f32 %v2965_v8, %v473_v43  ;;  %v594_v7 = vld [vmem:[%s2960_s20 + $0x58] sm:$0xff] }
 0x141   : > { %v2165_v61 = vpop.eup %2164  ;;  %1748 = vst [vmem:[%s2982_s11 + $0x30] sm:$0xff] %v1684_v50  ;;  %v1616_v62 = vmul.f32 %v1552_v51, %v591_v46  ;;  %v1491_v63 = vadd.f32 1.0, %v2163_v54  ;;  %2172 = vtanh.f32 %v1366_v52  ;;  %v1305_v0 = vmul.f32 %v1241_v53, %v536_v48  ;;  %v796_v28 = vpop.permute.xlu1 %795  ;;  %v484_v53 = vld [vmem:[%s2831_s2 + $0xe8] sm:$0xff] }
 0x142   : > { %v1687_v4 = vmul.f32 %v2969_v15, %v1617_v55  ;;  %v1490_v5 = vadd.f32 1.0, %v2165_v61  ;;  %2174 = vtanh.f32 %v1048_v49  ;;  %v1051_v8 = vmul.f32 0.5, %v987_v58 }
 0x143   : > { %v1686_v10 = vmul.f32 %v2969_v15, %v1616_v62  ;;  %v1555_v11 = vmul.f32 0.5, %v1491_v63  ;;  %v1369_v13 = vmul.f32 0.5, %v1305_v0  ;;  %v1050_v14 = vmul.f32 0.5, %v986_v59  ;;  %v597_v63 = vld [vmem:[%s2960_s20 + $0x70] sm:$0xff] }
 0x144   : > { %1751 = vst [vmem:[%s2982_s11 + $0x48] sm:$0xff] %v1687_v4  ;;  %v1554_v16 = vmul.f32 0.5, %v1490_v5  ;;  %2176 = vtanh.f32 %v1051_v8  ;;  %v989_v17 = vmul.f32 %v2974_v31, %v476_v1  ;;  %v988_v18 = vmul.f32 %v2976_v32, %v475_v2  ;;  %v480_v31 = vld [vmem:[%s2831_s2 + $0xc8] sm:$0xff]  ;;  %v479_v32 = vld [vmem:[%s2831_s2 + $0xc0] sm:$0xff] }
 0x145   : > { %v2167_v19 = vpop.eup %2166  ;;  %1750 = vst [vmem:[%s2982_s11 + $0x40] sm:$0xff] %v1686_v10  ;;  %v1619_v20 = vmul.f32 %v1555_v11, %v594_v7  ;;  %2178 = vtanh.f32 %v1369_v13  ;;  %v991_v21 = vmul.f32 %v2989_v56, %v478_v6  ;;  %v990_v22 = vmul.f32 %v2991_v57, %v477_v9  ;;  %v3044_v57 = vpop.permute.xlu0 %790  ;;  %v535_v4 = vld [vmem:[%s2839_s24 + $0x80] sm:$0xff] }
 0x146   : > { %v2169_v23 = vpop.eup %2168  ;;  %v1618_v24 = vmul.f32 %v1554_v16, %v593_v12  ;;  %v1493_v26 = vadd.f32 1.0, %v2167_v19  ;;  %2180 = vtanh.f32 %v1050_v14  ;;  %v1053_v27 = vmul.f32 0.5, %v989_v17  ;;  %v806_v61 = vpop.permute.xlu1 %805  ;;  %v483_v11 = vld [vmem:[%s2831_s2 + $0xe0] sm:$0xff]  ;;  %v538_v16 = vld [vmem:[%s2839_s24 + $0x98] sm:$0xff]  ;;  %v600_v19 = vld [vmem:[%s2960_s20 + $0x88] sm:$0xff] }
 0x147   : > { %v1689_v29 = vmul.f32 %v2969_v15, %v1619_v20  ;;  %v1492_v34 = vadd.f32 1.0, %v2169_v23  ;;  %v1052_v35 = vmul.f32 0.5, %v988_v18  ;;  %v1055_v56 = vmul.f32 0.5, %v991_v21  ;;  %v486_v23 = vld [vmem:[%s2831_s2 + $0xf8] sm:$0xff] }
 0x148   : > { %v1688_v38 = vmul.f32 %v2969_v15, %v1618_v24  ;;  %v1557_v39 = vmul.f32 0.5, %v1493_v26  ;;  %2182 = vtanh.f32 %v1053_v27  ;;  %v1054_v41 = vmul.f32 0.5, %v990_v22 }
 0x149   : > { %1753 = vst [vmem:[%s2982_s11 + $0x58] sm:$0xff] %v1689_v29  ;;  %v1556_v42 = vmul.f32 0.5, %v1492_v34  ;;  %2184 = vtanh.f32 %v1052_v35  ;;  %v993_v43 = vmul.f32 %v3003_v25, %v480_v31  ;;  %v992_v44 = vmul.f32 %v3006_v30, %v479_v32  ;;  %v598_v30 = vld [vmem:[%s2960_s20 + $0x78] sm:$0xff]  ;;  %v3058_v1 = vpop.permute.xlu0 %800  ;;  %v537_v31 = vld [vmem:[%s2839_s24 + $0x90] sm:$0xff] }
 0x14a   : > { %v2171_v45 = vpop.eup %2170  ;;  %1752 = vst [vmem:[%s2982_s11 + $0x50] sm:$0xff] %v1688_v38  ;;  %v1621_v46 = vmul.f32 %v1557_v39, %v596_v33  ;;  %2186 = vtanh.f32 %v1055_v56  ;;  %v995_v47 = vmul.f32 %v3021_v60, %v482_v36  ;;  %v994_v48 = vmul.f32 %v781_v3, %v481_v37  ;;  %v540_v39 = vld [vmem:[%s2839_s24 + $0xa8] sm:$0xff] }
 0x14b   : > { %v2173_v49 = vpop.eup %2172  ;;  %v1620_v50 = vmul.f32 %v1556_v42, %v595_v40  ;;  %v1495_v51 = vadd.f32 1.0, %v2171_v45  ;;  %2188 = vtanh.f32 %v1054_v41  ;;  %v1057_v52 = vmul.f32 0.5, %v993_v43 }
 0x14c   : > { %v2175_v54 = vpop.eup %2174  ;;  %v1691_v25 = vmul.f32 %v2969_v15, %v1621_v46  ;;  %v1494_v55 = vadd.f32 1.0, %v2173_v49  ;;  %v1056_v58 = vmul.f32 0.5, %v992_v44  ;;  %v1059_v59 = vmul.f32 0.5, %v995_v47  ;;  %v539_v46 = vld [vmem:[%s2839_s24 + $0xa0] sm:$0xff] }
 0x14d   : > { %v1690_v60 = vmul.f32 %v2969_v15, %v1620_v50  ;;  %v1559_v62 = vmul.f32 0.5, %v1495_v51  ;;  %v1176_v0 = vadd.f32 1.0, %v2175_v54  ;;  %2190 = vtanh.f32 %v1057_v52  ;;  %v3074_v36 = vpop.permute.xlu0 %810  ;;  %v485_v51 = vld [vmem:[%s2831_s2 + $0xf0] sm:$0xff] }
 0x14e   : > { %v2177_v2 = vpop.eup %2176  ;;  %1755 = vst [vmem:[%s2982_s11 + $0x68] sm:$0xff] %v1691_v25  ;;  %v1558_v3 = vmul.f32 0.5, %v1494_v55  ;;  %2192 = vtanh.f32 %v1056_v58  ;;  %v1058_v7 = vmul.f32 0.5, %v994_v48  ;;  %v997_v5 = vmul.f32 %v796_v28, %v484_v53  ;;  %v3071_v28 = vpop.permute.xlu1 %815  ;;  %v542_v25 = vld [vmem:[%s2839_s24 + $0xb8] sm:$0xff] }
 0x14f   : > { %v2179_v8 = vpop.eup %2178  ;;  %1754 = vst [vmem:[%s2982_s11 + $0x60] sm:$0xff] %v1690_v60  ;;  %v1623_v6 = vmul.f32 %v1559_v62, %v598_v30  ;;  %v1240_v9 = vmul.f32 0.5, %v1176_v0  ;;  %v1179_v10 = vadd.f32 1.0, %v2177_v2  ;;  %2194 = vtanh.f32 %v1059_v59  ;;  %v541_v30 = vld [vmem:[%s2839_s24 + $0xb0] sm:$0xff] }
 0x150   : > { %v2181_v12 = vpop.eup %2180  ;;  %v1622_v13 = vmul.f32 %v1558_v3, %v597_v63  ;;  %v1497_v14 = vadd.f32 1.0, %v2179_v8  ;;  %2196 = vtanh.f32 %v1058_v7  ;;  %v1061_v17 = vmul.f32 0.5, %v997_v5  ;;  %v544_v3 = vld [vmem:[%s2839_s24 + $0xc8] sm:$0xff] }
 0x151   : > { %v1693_v18 = vmul.f32 %v2969_v15, %v1623_v6  ;;  %v1304_v20 = vmul.f32 %v1240_v9, %v535_v4  ;;  %v1243_v21 = vmul.f32 0.5, %v1179_v10  ;;  %v1178_v22 = vadd.f32 1.0, %v2181_v12  ;;  %v821_v5 = vpop.permute.xlu0 %820  ;;  %v543_v12 = vld [vmem:[%s2839_s24 + $0xc0] sm:$0xff] }
 0x152   : > { %v2183_v24 = vpop.eup %2182  ;;  %v1692_v26 = vmul.f32 %v2969_v15, %v1622_v13  ;;  %v1561_v27 = vmul.f32 0.5, %v1497_v14  ;;  %2198 = vtanh.f32 %v1061_v17  ;;  %v996_v32 = vmul.f32 %v3044_v57, %v483_v11  ;;  %v3088_v63 = vpop.permute.xlu1 %825  ;;  %v488_v17 = vld [vmem:[%s2831_s2 + $0x108] sm:$0xff] }
 0x153   : > { %v2185_v29 = vpop.eup %2184  ;;  %1757 = vst [vmem:[%s2982_s11 + $0x78] sm:$0xff] %v1693_v18  ;;  %v1368_v33 = vmul.f32 0.5, %v1304_v20  ;;  %v1307_v34 = vmul.f32 %v1243_v21, %v538_v16  ;;  %v1242_v35 = vmul.f32 0.5, %v1178_v22  ;;  %v1181_v56 = vadd.f32 1.0, %v2183_v24  ;;  %v546_v21 = vld [vmem:[%s2839_s24 + $0xd8] sm:$0xff]  ;;  %v545_v22 = vld [vmem:[%s2839_s24 + $0xd0] sm:$0xff] }
 0x154   : > { %v2187_v37 = vpop.eup %2186  ;;  %1756 = vst [vmem:[%s2982_s11 + $0x70] sm:$0xff] %v1692_v26  ;;  %v1625_v38 = vmul.f32 %v1561_v27, %v600_v19  ;;  %v1180_v40 = vadd.f32 1.0, %v2185_v29  ;;  %v3078_v41 = vmul.f32 0.5, %v996_v32  ;;  %v999_v57 = vmul.f32 %v806_v61, %v486_v23 }
 0x155   : > { %v2189_v42 = vpop.eup %2188  ;;  %2200 = vtanh.f32 %v1368_v33  ;;  %v1371_v43 = vmul.f32 0.5, %v1307_v34  ;;  %v1306_v44 = vmul.f32 %v1242_v35, %v537_v31  ;;  %v1245_v45 = vmul.f32 0.5, %v1181_v56  ;;  %v487_v33 = vld [vmem:[%s2831_s2 + $0x100] sm:$0xff] }
 0x156   : > { %v1695_v47 = vmul.f32 %v2969_v15, %v1625_v38  ;;  %v1244_v48 = vmul.f32 0.5, %v1180_v40  ;;  %v1183_v49 = vadd.f32 1.0, %v2187_v37  ;;  %v1182_v50 = vadd.f32 1.0, %v2189_v42  ;;  %v836_v34 = vpop.permute.xlu1 %835  ;;  %v831_v40 = vpop.permute.xlu0 %830 }
 0x157   : > { %v2191_v52 = vpop.eup %2190  ;;  %2202 = vtanh.f32 %v1371_v43  ;;  %v1370_v53 = vmul.f32 0.5, %v1306_v44  ;;  %v1309_v54 = vmul.f32 %v1245_v45, %v540_v39  ;;  %v3085_v55 = vmul.f32 0.5, %v999_v57  ;;  %v548_v39 = vld [vmem:[%s2839_s24 + $0xe8] sm:$0xff]  ;;  %v490_v44 = vld [vmem:[%s2831_s2 + $0x118] sm:$0xff]  ;;  %v489_v45 = vld [vmem:[%s2831_s2 + $0x110] sm:$0xff] }
 0x158   : > { %v2193_v58 = vpop.eup %2192  ;;  %1759 = vst [vmem:[%s2982_s11 + $0x88] sm:$0xff] %v1695_v47  ;;  %v1308_v59 = vmul.f32 %v1244_v48, %v539_v46  ;;  %v1247_v61 = vmul.f32 0.5, %v1183_v49  ;;  %v1246_v60 = vmul.f32 0.5, %v1182_v50  ;;  %v1185_v62 = vadd.f32 1.0, %v2191_v52  ;;  %v599_v47 = vld [vmem:[%s2960_s20 + $0x80] sm:$0xff] }
 0x159   : > { %v2195_v0 = vpop.eup %2194  ;;  %2204 = vtanh.f32 %v1370_v53  ;;  %v1373_v2 = vmul.f32 0.5, %v1309_v54  ;;  %v1184_v4 = vadd.f32 1.0, %v2193_v58  ;;  %v998_v7 = vmul.f32 %v3058_v1, %v485_v51  ;;  %v602_v54 = vld [vmem:[%s2960_s20 + $0x98] sm:$0xff] }
 0x15a   : > { %v2197_v8 = vpop.eup %2196  ;;  %v1372_v6 = vmul.f32 0.5, %v1308_v59  ;;  %v1311_v9 = vmul.f32 %v1247_v61, %v542_v25  ;;  %v1310_v10 = vmul.f32 %v1246_v60, %v541_v30  ;;  %v1249_v11 = vmul.f32 0.5, %v1185_v62  ;;  %v491_v62 = vld [vmem:[%s2831_s2 + $0x120] sm:$0xff] }
 0x15b   : > { %2206 = vtanh.f32 %v1373_v2  ;;  %v1248_v13 = vmul.f32 0.5, %v1184_v4  ;;  %v1187_v14 = vadd.f32 1.0, %v2195_v0  ;;  %v1186_v16 = vadd.f32 1.0, %v2197_v8  ;;  %v3108_v0 = vpop.permute.xlu1 %845  ;;  %v3112_v8 = vpop.permute.xlu0 %840 }
 0x15c   : > { %v2199_v18 = vpop.eup %2198  ;;  %2208 = vtanh.f32 %v1372_v6  ;;  %v1375_v19 = vmul.f32 0.5, %v1311_v9  ;;  %v1374_v20 = vmul.f32 0.5, %v1310_v10  ;;  %v1313_v1 = vmul.f32 %v1249_v11, %v544_v3  ;;  %v601_v3 = vld [vmem:[%s2960_s20 + $0x90] sm:$0xff]  ;;  %v604_v11 = vld [vmem:[%s2960_s20 + $0xa8] sm:$0xff] }
 0x15d   : > { %v1312_v23 = vmul.f32 %v1248_v13, %v543_v12  ;;  %v1251_v24 = vmul.f32 0.5, %v1187_v14  ;;  %v1250_v26 = vmul.f32 0.5, %v1186_v16  ;;  %v1189_v27 = vadd.f32 1.0, %v2199_v18 }
 0x15e   : > { %2210 = vtanh.f32 %v1375_v19  ;;  %v1377_v31 = vmul.f32 0.5, %v1313_v1  ;;  %v1062_v32 = vmul.f32 0.5, %v998_v7  ;;  %v1001_v29 = vmul.f32 %v3071_v28, %v488_v17  ;;  %v603_v19 = vld [vmem:[%s2960_s20 + $0xa0] sm:$0xff] }
 0x15f   : > { %v2201_v35 = vpop.eup %2200  ;;  %2212 = vtanh.f32 %v1374_v20  ;;  %v1376_v56 = vmul.f32 0.5, %v1312_v23  ;;  %v1315_v37 = vmul.f32 %v1251_v24, %v546_v21  ;;  %v1314_v38 = vmul.f32 %v1250_v26, %v545_v22 }
 0x160   : > { %v1496_v57 = vadd.f32 1.0, %v2201_v35  ;;  %2214 = vtanh.f32 %v1377_v31  ;;  %v1253_v42 = vmul.f32 0.5, %v1189_v27  ;;  %v1065_v43 = vmul.f32 0.5, %v1001_v29  ;;  %v606_v27 = vld [vmem:[%s2960_s20 + $0xb8] sm:$0xff]  ;;  %v3124_v29 = vpop.permute.xlu1 %855  ;;  %v605_v35 = vld [vmem:[%s2960_s20 + $0xb0] sm:$0xff] }
 0x161   : > { %v2203_v46 = vpop.eup %2202  ;;  %2216 = vtanh.f32 %v1376_v56  ;;  %v1379_v28 = vmul.f32 0.5, %v1315_v37  ;;  %v1378_v48 = vmul.f32 0.5, %v1314_v38  ;;  %v1000_v49 = vmul.f32 %v3074_v36, %v487_v33  ;;  %v492_v36 = vld [vmem:[%s2831_s2 + $0x128] sm:$0xff]  ;;  %v3127_v37 = vpop.permute.xlu0 %850 }
 0x162   : > { %v1560_v50 = vmul.f32 0.5, %v1496_v57  ;;  %v1499_v51 = vadd.f32 1.0, %v2203_v46  ;;  %v1317_v52 = vmul.f32 %v1253_v42, %v548_v39  ;;  %2218 = vtanh.f32 %v3078_v41  ;;  %v608_v57 = vld [vmem:[%s2960_s20 + $0xc8] sm:$0xff] }
 0x163   : > { %v2205_v53 = vpop.eup %2204  ;;  %2220 = vtanh.f32 %v1379_v28  ;;  %v1064_v25 = vmul.f32 0.5, %v1000_v49  ;;  %v1003_v30 = vmul.f32 %v3088_v63, %v490_v44  ;;  %v1002_v58 = vmul.f32 %v821_v5, %v489_v45 }
 0x164   : > { %v1624_v59 = vmul.f32 %v1560_v50, %v599_v47  ;;  %v1563_v61 = vmul.f32 0.5, %v1499_v51  ;;  %v1498_v60 = vadd.f32 1.0, %v2205_v53  ;;  %2222 = vtanh.f32 %v1378_v48  ;;  %v607_v47 = vld [vmem:[%s2960_s20 + $0xc0] sm:$0xff] }
 0x165   : > { %v2207_v2 = vpop.eup %2206  ;;  %v1381_v4 = vmul.f32 0.5, %v1317_v52  ;;  %2224 = vtanh.f32 %v3085_v55  ;;  %v1067_v41 = vmul.f32 0.5, %v1003_v30  ;;  %v1066_v7 = vmul.f32 0.5, %v1002_v58  ;;  %v547_v52 = vld [vmem:[%s2839_s24 + $0xe0] sm:$0xff]  ;;  %v610_v30 = vld [vmem:[%s2960_s20 + $0xd8] sm:$0xff] }
 0x166   : > { %v2209_v63 = vpop.eup %2208  ;;  %v1694_v5 = vmul.f32 %v2969_v15, %v1624_v59  ;;  %v1627_v6 = vmul.f32 %v1563_v61, %v602_v54  ;;  %v1562_v9 = vmul.f32 0.5, %v1498_v60  ;;  %v1501_v10 = vadd.f32 1.0, %v2207_v2 }
 0x167   : > { %v1500_v12 = vadd.f32 1.0, %v2209_v63  ;;  %2226 = vtanh.f32 %v1381_v4  ;;  %v1005_v13 = vmul.f32 %v836_v34, %v492_v36  ;;  %v3116_v14 = vmul.f32 %v831_v40, %v491_v62  ;;  %v609_v62 = vld [vmem:[%s2960_s20 + $0xd0] sm:$0xff] }
 0x168   : > { %v2211_v16 = vpop.eup %2210  ;;  %1758 = vst [vmem:[%s2982_s11 + $0x80] sm:$0xff] %v1694_v5  ;;  %v1697_v55 = vmul.f32 %v2969_v15, %v1627_v6  ;;  %v1626_v17 = vmul.f32 %v1562_v9, %v601_v3  ;;  %v1565_v18 = vmul.f32 0.5, %v1501_v10  ;;  %2228 = vtanh.f32 %v1062_v32  ;;  %v3141_v3 = vpop.permute.xlu1 %865  ;;  %v550_v5 = vld [vmem:[%s2839_s24 + $0xf8] sm:$0xff] }
 0x169   : > { %v2213_v20 = vpop.eup %2212  ;;  %v1564_v1 = vmul.f32 0.5, %v1500_v12  ;;  %v1503_v21 = vadd.f32 1.0, %v2211_v16  ;;  %2230 = vtanh.f32 %v1065_v43  ;;  %v1069_v22 = vmul.f32 0.5, %v1005_v13  ;;  %v3147_v9 = vpop.permute.xlu0 %860 }
 0x16a   : > { %v2215_v23 = vpop.eup %2214  ;;  %1761 = vst [vmem:[%s2982_s11 + $0x98] sm:$0xff] %v1697_v55  ;;  %v1696_v24 = vmul.f32 %v2969_v15, %v1626_v17  ;;  %v1629_v26 = vmul.f32 %v1565_v18, %v604_v11  ;;  %v1502_v31 = vadd.f32 1.0, %v2213_v20  ;;  %2232 = vtanh.f32 %v1064_v25  ;;  %v612_v18 = vld [vmem:[%s2960_s20 + $0xe8] sm:$0xff] }
 0x16b   : > { %v2217_v33 = vpop.eup %2216  ;;  %v1628_v32 = vmul.f32 %v1564_v1, %v603_v19  ;;  %v1567_v34 = vmul.f32 0.5, %v1503_v21  ;;  %v1505_v56 = vadd.f32 1.0, %v2215_v23  ;;  %2234 = vtanh.f32 %v1067_v41  ;;  %v549_v23 = vld [vmem:[%s2839_s24 + $0xf0] sm:$0xff] }
 0x16c   : > { %v2219_v38 = vpop.eup %2218  ;;  %1760 = vst [vmem:[%s2982_s11 + $0x90] sm:$0xff] %v1696_v24  ;;  %v1699_v39 = vmul.f32 %v2969_v15, %v1629_v26  ;;  %v1566_v40 = vmul.f32 0.5, %v1502_v31  ;;  %v1504_v42 = vadd.f32 1.0, %v2217_v33  ;;  %2236 = vtanh.f32 %v1066_v7  ;;  %v494_v26 = vld [vmem:[%s2831_s2 + $0x138] sm:$0xff] }
 0x16d   : > { %v2221_v43 = vpop.eup %2220  ;;  %v1698_v44 = vmul.f32 %v2969_v15, %v1628_v32  ;;  %v1631_v45 = vmul.f32 %v1567_v34, %v606_v27  ;;  %v1569_v46 = vmul.f32 0.5, %v1505_v56  ;;  %v1188_v28 = vadd.f32 1.0, %v2219_v38  ;;  %v552_v32 = vld [vmem:[%s2839_s24 + $0x108] sm:$0xff] }
 0x16e   : > { %v2223_v48 = vpop.eup %2222  ;;  %1763 = vst [vmem:[%s2982_s11 + $0xa8] sm:$0xff] %v1699_v39  ;;  %v1630_v49 = vmul.f32 %v1566_v40, %v605_v35  ;;  %v1568_v50 = vmul.f32 0.5, %v1504_v42  ;;  %v1507_v51 = vadd.f32 1.0, %v2221_v43  ;;  %2238 = vtanh.f32 %v1069_v22  ;;  %v551_v40 = vld [vmem:[%s2839_s24 + $0x100] sm:$0xff]  ;;  %v3161_v42 = vpop.permute.xlu1 %875 }
 0x16f   : > { %v2225_v53 = vpop.eup %2224  ;;  %1762 = vst [vmem:[%s2982_s11 + $0xa0] sm:$0xff] %v1698_v44  ;;  %v1701_v54 = vmul.f32 %v2969_v15, %v1631_v45  ;;  %v1633_v25 = vmul.f32 %v1569_v46, %v608_v57  ;;  %v1506_v58 = vadd.f32 1.0, %v2223_v48  ;;  %v1252_v59 = vmul.f32 0.5, %v1188_v28  ;;  %v554_v45 = vld [vmem:[%s2839_s24 + $0x118] sm:$0xff]  ;;  %v493_v28 = vld [vmem:[%s2831_s2 + $0x130] sm:$0xff]  ;;  %v871_v48 = vpop.permute.xlu0 %870 }
 0x170   : > { %v1700_v61 = vmul.f32 %v2969_v15, %v1630_v49  ;;  %v1632_v60 = vmul.f32 %v1568_v50, %v607_v47  ;;  %v1571_v36 = vmul.f32 0.5, %v1507_v51  ;;  %v1191_v2 = vadd.f32 1.0, %v2225_v53  ;;  %v553_v53 = vld [vmem:[%s2839_s24 + $0x110] sm:$0xff] }
 0x171   : > { %v2227_v4 = vpop.eup %2226  ;;  %1765 = vst [vmem:[%s2982_s11 + $0xb8] sm:$0xff] %v1701_v54  ;;  %v1703_v41 = vmul.f32 %v2969_v15, %v1633_v25  ;;  %v1570_v7 = vmul.f32 0.5, %v1506_v58  ;;  %v1316_v63 = vmul.f32 %v1252_v59, %v547_v52  ;;  %v1068_v6 = vmul.f32 0.5, %v3116_v14  ;;  %v496_v59 = vld [vmem:[%s2831_s2 + $0x148] sm:$0xff] }
 0x172   : > { %v2229_v10 = vpop.eup %2228  ;;  %1764 = vst [vmem:[%s2982_s11 + $0xb0] sm:$0xff] %v1700_v61  ;;  %v1702_v11 = vmul.f32 %v2969_v15, %v1632_v60  ;;  %v1635_v12 = vmul.f32 %v1571_v36, %v610_v30  ;;  %v1509_v13 = vadd.f32 1.0, %v2227_v4  ;;  %v1255_v16 = vmul.f32 0.5, %v1191_v2  ;;  %v556_v60 = vld [vmem:[%s2839_s24 + $0x128] sm:$0xff] }
 0x173   : > { %v2231_v55 = vpop.eup %2230  ;;  %1767 = vst [vmem:[%s2982_s11 + $0xc8] sm:$0xff] %v1703_v41  ;;  %v1634_v17 = vmul.f32 %v1570_v7, %v609_v62  ;;  %v1380_v19 = vmul.f32 0.5, %v1316_v63  ;;  %v1190_v20 = vadd.f32 1.0, %v2229_v10  ;;  %2240 = vtanh.f32 %v1068_v6  ;;  %v498_v7 = vld [vmem:[%s2831_s2 + $0x158] sm:$0xff]  ;;  %v497_v10 = vld [vmem:[%s2831_s2 + $0x150] sm:$0xff] }
 0x174   : > { %v2233_v14 = vpop.eup %2232  ;;  %1766 = vst [vmem:[%s2982_s11 + $0xc0] sm:$0xff] %v1702_v11  ;;  %v1705_v1 = vmul.f32 %v2969_v15, %v1635_v12  ;;  %v1573_v21 = vmul.f32 0.5, %v1509_v13  ;;  %v1319_v22 = vmul.f32 %v1255_v16, %v550_v5  ;;  %v1193_v24 = vadd.f32 1.0, %v2231_v55  ;;  %v886_v11 = vpop.permute.xlu1 %885 }
 0x175   : > { %v2235_v27 = vpop.eup %2234  ;;  %v1704_v31 = vmul.f32 %v2969_v15, %v1634_v17  ;;  %2242 = vtanh.f32 %v1380_v19  ;;  %v1254_v33 = vmul.f32 0.5, %v1190_v20  ;;  %v1192_v34 = vadd.f32 1.0, %v2233_v14  ;;  %v881_v55 = vpop.permute.xlu0 %880  ;;  %v500_v20 = vld [vmem:[%s2831_s2 + $0x168] sm:$0xff]  ;;  %v499_v14 = vld [vmem:[%s2831_s2 + $0x160] sm:$0xff] }
 0x176   : > { %v2237_v35 = vpop.eup %2236  ;;  %1769 = vst [vmem:[%s2982_s11 + $0xd8] sm:$0xff] %v1705_v1  ;;  %v1637_v56 = vmul.f32 %v1573_v21, %v612_v18  ;;  %v1383_v38 = vmul.f32 0.5, %v1319_v22  ;;  %v1257_v39 = vmul.f32 0.5, %v1193_v24  ;;  %v1195_v57 = vadd.f32 1.0, %v2235_v27  ;;  %v555_v21 = vld [vmem:[%s2839_s24 + $0x120] sm:$0xff]  ;;  %v502_v24 = vld [vmem:[%s2831_s2 + $0x178] sm:$0xff] }
 0x177   : > { %1768 = vst [vmem:[%s2982_s11 + $0xd0] sm:$0xff] %v1704_v31  ;;  %v1318_v43 = vmul.f32 %v1254_v33, %v549_v23  ;;  %v1256_v44 = vmul.f32 0.5, %v1192_v34  ;;  %v1194_v46 = vadd.f32 1.0, %v2237_v35  ;;  %v1007_v47 = vmul.f32 %v3108_v0, %v494_v26  ;;  %v611_v31 = vld [vmem:[%s2960_s20 + $0xe0] sm:$0xff] }
 0x178   : > { %v2239_v49 = vpop.eup %2238  ;;  %v1707_v50 = vmul.f32 %v2969_v15, %v1637_v56  ;;  %2244 = vtanh.f32 %v1383_v38  ;;  %v1321_v51 = vmul.f32 %v1257_v39, %v552_v32  ;;  %v1259_v52 = vmul.f32 0.5, %v1195_v57  ;;  %v495_v15 = vld [vmem:[%s2831_s2 + $0x140] sm:$0xff]  ;;  %v501_v38 = vld [vmem:[%s2831_s2 + $0x170] sm:$0xff]  ;;  %v504_v39 = vld [vmem:[%s2831_s2 + $0x188] sm:$0xff] }
 0x179   : > { %v1382_v54 = vmul.f32 0.5, %v1318_v43  ;;  %v1320_v25 = vmul.f32 %v1256_v44, %v551_v40  ;;  %v1258_v30 = vmul.f32 0.5, %v1194_v46  ;;  %v1197_v58 = vadd.f32 1.0, %v2239_v49  ;;  %v896_v40 = vpop.permute.xlu1 %895  ;;  %v891_v46 = vpop.permute.xlu0 %890 }
 0x17a   : > { %1771 = vst [vmem:[%s2982_s11 + $0xe8] sm:$0xff] %v1707_v50  ;;  %v1385_v0 = vmul.f32 0.5, %v1321_v51  ;;  %v1323_v61 = vmul.f32 %v1259_v52, %v554_v45  ;;  %v1071_v36 = vmul.f32 0.5, %v1007_v47  ;;  %v1006_v62 = vmul.f32 %v3112_v8, %v493_v28  ;;  %v503_v45 = vld [vmem:[%s2831_s2 + $0x180] sm:$0xff]  ;;  %v614_v28 = vld [vmem:[%s2960_s20 + $0xf8] sm:$0xff] }
 0x17b   : > { %2246 = vtanh.f32 %v1382_v54  ;;  %v1384_v2 = vmul.f32 0.5, %v1320_v25  ;;  %v1322_v4 = vmul.f32 %v1258_v30, %v553_v53  ;;  %v1261_v41 = vmul.f32 0.5, %v1197_v58  ;;  %v3191_v54 = vld [vmem:[%s2957_s15] ss:$0 sm:$0xff] }
 0x17c   : > { %2248 = vtanh.f32 %v1385_v0  ;;  %v1387_v63 = vmul.f32 0.5, %v1323_v61  ;;  %v1070_v5 = vmul.f32 0.5, %v1006_v62  ;;  %v1009_v6 = vmul.f32 %v3124_v29, %v496_v59  ;;  %v613_v61 = vld [vmem:[%s2960_s20 + $0xf0] sm:$0xff] }
 0x17d   : > { %v2241_v12 = vpop.eup %2240  ;;  %2250 = vtanh.f32 %v1384_v2  ;;  %v1386_v13 = vmul.f32 0.5, %v1322_v4  ;;  %v1325_v8 = vmul.f32 %v1261_v41, %v556_v60  ;;  %v1008_v16 = vmul.f32 %v3127_v37, %v495_v15  ;;  %v616_v2 = vld [vmem:[%s2960_s20 + $0x108] sm:$0xff] }
 0x17e   : > { %2252 = vtanh.f32 %v1387_v63  ;;  %v1196_v17 = vadd.f32 1.0, %v2241_v12  ;;  %v1073_v18 = vmul.f32 0.5, %v1009_v6  ;;  %v1011_v19 = vmul.f32 %v3141_v3, %v498_v7  ;;  %v615_v6 = vld [vmem:[%s2960_s20 + $0x100] sm:$0xff] }
 0x17f   : > { %v2243_v29 = vpop.eup %2242  ;;  %2254 = vtanh.f32 %v1386_v13  ;;  %v1389_v1 = vmul.f32 0.5, %v1325_v8  ;;  %v1072_v22 = vmul.f32 0.5, %v1008_v16  ;;  %v1010_v23 = vmul.f32 %v3147_v9, %v497_v10  ;;  %v618_v8 = vld [vmem:[%s2960_s20 + $0x118] sm:$0xff] }
 0x180   : > { %v1508_v37 = vadd.f32 1.0, %v2243_v29  ;;  %v1260_v26 = vmul.f32 0.5, %v1196_v17  ;;  %2256 = vtanh.f32 %v1071_v36  ;;  %v1075_v27 = vmul.f32 0.5, %v1011_v19  ;;  %v617_v19 = vld [vmem:[%s2960_s20 + $0x110] sm:$0xff] }
 0x181   : > { %2258 = vtanh.f32 %v1389_v1  ;;  %v1074_v3 = vmul.f32 0.5, %v1010_v23  ;;  %v1013_v33 = vmul.f32 %v3161_v42, %v500_v20  ;;  %v1012_v32 = vmul.f32 %v871_v48, %v499_v14  ;;  %v3206_v14 = vpop.permute.xlu1 %905 }
 0x182   : > { %v2245_v34 = vpop.eup %2244  ;;  %v1572_v35 = vmul.f32 0.5, %v1508_v37  ;;  %v1324_v56 = vmul.f32 %v1260_v26, %v555_v21  ;;  %2260 = vtanh.f32 %v1070_v5  ;;  %v1015_v9 = vmul.f32 %v886_v11, %v502_v24  ;;  %v558_v24 = vld [vmem:[%s2839_s24 + $0x138] sm:$0xff] }
 0x183   : > { %v1511_v57 = vadd.f32 1.0, %v2245_v34  ;;  %2262 = vtanh.f32 %v1073_v18  ;;  %v1077_v43 = vmul.f32 0.5, %v1013_v33  ;;  %v1076_v44 = vmul.f32 0.5, %v1012_v32 }
 0x184   : > { %v1636_v47 = vmul.f32 %v1572_v35, %v611_v31  ;;  %v1388_v42 = vmul.f32 0.5, %v1324_v56  ;;  %2264 = vtanh.f32 %v1072_v22  ;;  %v1079_v48 = vmul.f32 0.5, %v1015_v9  ;;  %v620_v31 = vld [vmem:[%s2960_s20 + $0x128] sm:$0xff]  ;;  %v557_v9 = vld [vmem:[%s2839_s24 + $0x130] sm:$0xff] }
 0x185   : > { %v2247_v49 = vpop.eup %2246  ;;  %v1575_v50 = vmul.f32 0.5, %v1511_v57  ;;  %2266 = vtanh.f32 %v1075_v27  ;;  %v1014_v51 = vmul.f32 %v881_v55, %v501_v38  ;;  %v1017_v52 = vmul.f32 %v896_v40, %v504_v39 }
 0x186   : > { %v2249_v53 = vpop.eup %2248  ;;  %v1706_v25 = vmul.f32 %v3191_v54, %v1636_v47  ;;  %v1510_v30 = vadd.f32 1.0, %v2247_v49  ;;  %2268 = vtanh.f32 %v1388_v42  ;;  %v3194_v58 = vmul.f32 %v891_v46, %v503_v45 }
 0x187   : > { %v2251_v59 = vpop.eup %2250  ;;  %v1639_v0 = vmul.f32 %v1575_v50, %v614_v28  ;;  %v1513_v60 = vadd.f32 1.0, %v2249_v53  ;;  %2270 = vtanh.f32 %v1074_v3  ;;  %v1078_v36 = vmul.f32 0.5, %v1014_v51  ;;  %v3221_v50 = vpop.permute.xlu0 %900 }
 0x188   : > { %v2253_v62 = vpop.eup %2252  ;;  %1770 = vst [vmem:[%s2982_s11 + $0xe0] sm:$0xff] %v1706_v25  ;;  %v1574_v15 = vmul.f32 0.5, %v1510_v30  ;;  %v1512_v4 = vadd.f32 1.0, %v2251_v59  ;;  %2272 = vtanh.f32 %v1077_v43  ;;  %v3199_v41 = vmul.f32 0.5, %v1017_v52  ;;  %v562_v59 = vld [vmem:[%s2839_s24 + $0x158] sm:$0xff] }
 0x189   : > { %v2255_v7 = vpop.eup %2254  ;;  %v1709_v63 = vmul.f32 %v3191_v54, %v1639_v0  ;;  %v1577_v5 = vmul.f32 0.5, %v1513_v60  ;;  %v1515_v10 = vadd.f32 1.0, %v2253_v62  ;;  %2274 = vtanh.f32 %v1076_v44  ;;  %v560_v44 = vld [vmem:[%s2839_s24 + $0x148] sm:$0xff]  ;;  %v3225_v0 = vpop.permute.xlu1 %915 }
 0x18a   : > { %v2257_v11 = vpop.eup %2256  ;;  %v1638_v12 = vmul.f32 %v1574_v15, %v613_v61  ;;  %v1576_v13 = vmul.f32 0.5, %v1512_v4  ;;  %v1514_v16 = vadd.f32 1.0, %v2255_v7  ;;  %2276 = vtanh.f32 %v1079_v48  ;;  %v559_v48 = vld [vmem:[%s2839_s24 + $0x140] sm:$0xff] }
 0x18b   : > { %v2259_v55 = vpop.eup %2258  ;;  %1773 = vst [vmem:[%s2982_s11 + $0xf8] sm:$0xff] %v1709_v63  ;;  %v1641_v17 = vmul.f32 %v1577_v5, %v616_v2  ;;  %v1579_v18 = vmul.f32 0.5, %v1515_v10  ;;  %v1199_v20 = vadd.f32 1.0, %v2257_v11  ;;  %2278 = vtanh.f32 %v1078_v36  ;;  %v619_v36 = vld [vmem:[%s2960_s20 + $0x120] sm:$0xff] }
 0x18c   : > { %v2261_v29 = vpop.eup %2260  ;;  %v1708_v1 = vmul.f32 %v3191_v54, %v1638_v12  ;;  %v1640_v21 = vmul.f32 %v1576_v13, %v615_v6  ;;  %v1578_v22 = vmul.f32 0.5, %v1514_v16  ;;  %v1517_v23 = vadd.f32 1.0, %v2259_v55  ;;  %v561_v6 = vld [vmem:[%s2839_s24 + $0x150] sm:$0xff] }
 0x18d   : > { %v2263_v37 = vpop.eup %2262  ;;  %v1711_v26 = vmul.f32 %v3191_v54, %v1641_v17  ;;  %v1643_v27 = vmul.f32 %v1579_v18, %v618_v8  ;;  %v1263_v3 = vmul.f32 0.5, %v1199_v20  ;;  %v1198_v33 = vadd.f32 1.0, %v2261_v29  ;;  %v564_v18 = vld [vmem:[%s2839_s24 + $0x168] sm:$0xff] }
 0x18e   : > { %v2265_v32 = vpop.eup %2264  ;;  %1772 = vst [vmem:[%s2982_s11 + $0xf0] sm:$0xff] %v1708_v1  ;;  %v1710_v34 = vmul.f32 %v3191_v54, %v1640_v21  ;;  %v1642_v35 = vmul.f32 %v1578_v22, %v617_v19  ;;  %v1581_v56 = vmul.f32 0.5, %v1517_v23  ;;  %v1201_v38 = vadd.f32 1.0, %v2263_v37  ;;  %v563_v21 = vld [vmem:[%s2839_s24 + $0x160] sm:$0xff]  ;;  %v911_v22 = vpop.permute.xlu0 %910 }
 0x18f   : > { %v2267_v39 = vpop.eup %2266  ;;  %1775 = vst [vmem:[%s2982_s11 + $0x108] sm:$0xff] %v1711_v26  ;;  %v1713_v40 = vmul.f32 %v3191_v54, %v1643_v27  ;;  %v1327_v57 = vmul.f32 %v1263_v3, %v558_v24  ;;  %v1262_v43 = vmul.f32 0.5, %v1198_v33  ;;  %v1200_v45 = vadd.f32 1.0, %v2265_v32  ;;  %v506_v26 = vld [vmem:[%s2831_s2 + $0x198] sm:$0xff]  ;;  %v926_v27 = vpop.permute.xlu1 %925 }
 0x190   : > { %v2269_v46 = vpop.eup %2268  ;;  %1774 = vst [vmem:[%s2982_s11 + $0x100] sm:$0xff] %v1710_v34  ;;  %v1712_v47 = vmul.f32 %v3191_v54, %v1642_v35  ;;  %v1645_v28 = vmul.f32 %v1581_v56, %v620_v31  ;;  %v1265_v42 = vmul.f32 0.5, %v1201_v38  ;;  %v1203_v49 = vadd.f32 1.0, %v2267_v39  ;;  %v566_v33 = vld [vmem:[%s2839_s24 + $0x178] sm:$0xff]  ;;  %v505_v34 = vld [vmem:[%s2831_s2 + $0x190] sm:$0xff]  ;;  %v508_v39 = vld [vmem:[%s2831_s2 + $0x1a8] sm:$0xff] }
 0x191   : > { %v2271_v51 = vpop.eup %2270  ;;  %1777 = vst [vmem:[%s2982_s11 + $0x118] sm:$0xff] %v1713_v40  ;;  %v1516_v52 = vadd.f32 1.0, %v2269_v46  ;;  %v1391_v53 = vmul.f32 0.5, %v1327_v57  ;;  %v1326_v25 = vmul.f32 %v1262_v43, %v557_v9  ;;  %v1264_v30 = vmul.f32 0.5, %v1200_v45  ;;  %v565_v9 = vld [vmem:[%s2839_s24 + $0x170] sm:$0xff] }
 0x192   : > { %v2273_v61 = vpop.eup %2272  ;;  %1776 = vst [vmem:[%s2982_s11 + $0x110] sm:$0xff] %v1712_v47  ;;  %v1715_v60 = vmul.f32 %v3191_v54, %v1645_v28  ;;  %v1329_v62 = vmul.f32 %v1265_v42, %v560_v44  ;;  %v1267_v15 = vmul.f32 0.5, %v1203_v49  ;;  %v1202_v2 = vadd.f32 1.0, %v2271_v51  ;;  %v507_v44 = vld [vmem:[%s2831_s2 + $0x1a0] sm:$0xff]  ;;  %v921_v49 = vpop.permute.xlu0 %920 }
 0x193   : > { %v2275_v4 = vpop.eup %2274  ;;  %v1580_v7 = vmul.f32 0.5, %v1516_v52  ;;  %2280 = vtanh.f32 %v1391_v53  ;;  %v1390_v63 = vmul.f32 0.5, %v1326_v25  ;;  %v1328_v5 = vmul.f32 %v1264_v30, %v559_v48  ;;  %v509_v48 = vld [vmem:[%s2831_s2 + $0x1b0] sm:$0xff]  ;;  %v512_v25 = vld [vmem:[%s2831_s2 + $0x1c8] sm:$0xff]  ;;  %v936_v30 = vpop.permute.xlu1 %935 }
 0x194   : > { %v2277_v10 = vpop.eup %2276  ;;  %1779 = vst [vmem:[%s2982_s11 + $0x128] sm:$0xff] %v1715_v60  ;;  %v1393_v11 = vmul.f32 0.5, %v1329_v62  ;;  %v1331_v12 = vmul.f32 %v1267_v15, %v562_v59  ;;  %v1266_v13 = vmul.f32 0.5, %v1202_v2  ;;  %v1205_v8 = vadd.f32 1.0, %v2273_v61 }
 0x195   : > { %v2279_v16 = vpop.eup %2278  ;;  %v1644_v55 = vmul.f32 %v1580_v7, %v619_v36  ;;  %2282 = vtanh.f32 %v1390_v63  ;;  %v1392_v17 = vmul.f32 0.5, %v1328_v5  ;;  %v1204_v19 = vadd.f32 1.0, %v2275_v4  ;;  %v622_v36 = vld [vmem:[%s2960_s20 + $0x138] sm:$0xff] }
 0x196   : > { %2284 = vtanh.f32 %v1393_v11  ;;  %v1395_v20 = vmul.f32 0.5, %v1331_v12  ;;  %v1330_v29 = vmul.f32 %v1266_v13, %v561_v6  ;;  %v1269_v1 = vmul.f32 0.5, %v1205_v8  ;;  %v621_v6 = vld [vmem:[%s2960_s20 + $0x130] sm:$0xff] }
 0x197   : > { %v1714_v23 = vmul.f32 %v3191_v54, %v1644_v55  ;;  %2286 = vtanh.f32 %v1392_v17  ;;  %v1268_v24 = vmul.f32 0.5, %v1204_v19  ;;  %v1207_v37 = vadd.f32 1.0, %v2277_v10  ;;  %v624_v55 = vld [vmem:[%s2960_s20 + $0x148] sm:$0xff] }
 0x198   : > { %2288 = vtanh.f32 %v1395_v20  ;;  %v1394_v31 = vmul.f32 0.5, %v1330_v29  ;;  %v1333_v3 = vmul.f32 %v1269_v1, %v564_v18  ;;  %v1206_v32 = vadd.f32 1.0, %v2279_v16  ;;  %v623_v20 = vld [vmem:[%s2960_s20 + $0x140] sm:$0xff] }
 0x199   : > { %1778 = vst [vmem:[%s2982_s11 + $0x120] sm:$0xff] %v1714_v23  ;;  %v1332_v35 = vmul.f32 %v1268_v24, %v563_v21  ;;  %v1271_v56 = vmul.f32 0.5, %v1207_v37  ;;  %2290 = vtanh.f32 %v3199_v41  ;;  %v1080_v38 = vmul.f32 0.5, %v3194_v58  ;;  %v510_v58 = vld [vmem:[%s2831_s2 + $0x1b8] sm:$0xff]  ;;  %v3258_v21 = vpop.permute.xlu0 %930 }
 0x19a   : > { %2292 = vtanh.f32 %v1394_v31  ;;  %v1397_v40 = vmul.f32 0.5, %v1333_v3  ;;  %v1270_v57 = vmul.f32 0.5, %v1206_v32  ;;  %v1019_v43 = vmul.f32 %v3206_v14, %v506_v26  ;;  %v626_v26 = vld [vmem:[%s2960_s20 + $0x158] sm:$0xff] }
 0x19b   : > { %v1396_v45 = vmul.f32 0.5, %v1332_v35  ;;  %v1335_v46 = vmul.f32 %v1271_v56, %v566_v33  ;;  %2294 = vtanh.f32 %v1080_v38  ;;  %v1018_v47 = vmul.f32 %v3221_v50, %v505_v34  ;;  %v568_v34 = vld [vmem:[%s2839_s24 + $0x188] sm:$0xff]  ;;  %v625_v38 = vld [vmem:[%s2960_s20 + $0x150] sm:$0xff] }
 0x19c   : > { %2296 = vtanh.f32 %v1397_v40  ;;  %v1334_v28 = vmul.f32 %v1270_v57, %v565_v9  ;;  %v1083_v41 = vmul.f32 0.5, %v1019_v43  ;;  %v1021_v42 = vmul.f32 %v3225_v0, %v508_v39 }
 0x19d   : > { %v2281_v51 = vpop.eup %2280  ;;  %2298 = vtanh.f32 %v1396_v45  ;;  %v1399_v52 = vmul.f32 0.5, %v1335_v46  ;;  %v1082_v14 = vmul.f32 0.5, %v1018_v47  ;;  %v1020_v53 = vmul.f32 %v911_v22, %v507_v44  ;;  %v567_v47 = vld [vmem:[%s2839_s24 + $0x180] sm:$0xff] }
 0x19e   : > { %v1519_v59 = vadd.f32 1.0, %v2281_v51  ;;  %v1398_v61 = vmul.f32 0.5, %v1334_v28  ;;  %2300 = vtanh.f32 %v1083_v41  ;;  %v1085_v50 = vmul.f32 0.5, %v1021_v42  ;;  %v628_v42 = vld [vmem:[%s2960_s20 + $0x168] sm:$0xff]  ;;  %v3271_v51 = vpop.permute.xlu1 %945 }
 0x19f   : > { %v2283_v60 = vpop.eup %2282  ;;  %2302 = vtanh.f32 %v1399_v52  ;;  %v1084_v0 = vmul.f32 0.5, %v1020_v53  ;;  %v1023_v62 = vmul.f32 %v926_v27, %v510_v58  ;;  %v1022_v15 = vmul.f32 %v921_v49, %v509_v48 }
 0x1a0   : > { %v2285_v2 = vpop.eup %2284  ;;  %v1583_v4 = vmul.f32 0.5, %v1519_v59  ;;  %v1518_v7 = vadd.f32 1.0, %v2283_v60  ;;  %2304 = vtanh.f32 %v1398_v61  ;;  %v1025_v63 = vmul.f32 %v936_v30, %v512_v25  ;;  %v627_v30 = vld [vmem:[%s2960_s20 + $0x160] sm:$0xff]  ;;  %v3276_v61 = vpop.permute.xlu0 %940 }
 0x1a1   : > { %v2287_v5 = vpop.eup %2286  ;;  %v1521_v10 = vadd.f32 1.0, %v2285_v2  ;;  %2306 = vtanh.f32 %v1082_v14  ;;  %v1087_v11 = vmul.f32 0.5, %v1023_v62  ;;  %v3252_v12 = vmul.f32 0.5, %v1022_v15  ;;  %v570_v15 = vld [vmem:[%s2839_s24 + $0x198] sm:$0xff] }
 0x1a2   : > { %v2289_v13 = vpop.eup %2288  ;;  %v1647_v8 = vmul.f32 %v1583_v4, %v622_v36  ;;  %v1582_v16 = vmul.f32 0.5, %v1518_v7  ;;  %v1520_v17 = vadd.f32 1.0, %v2287_v5  ;;  %2308 = vtanh.f32 %v1085_v50 }
 0x1a3   : > { %v2291_v18 = vpop.eup %2290  ;;  %v1585_v19 = vmul.f32 0.5, %v1521_v10  ;;  %v1523_v29 = vadd.f32 1.0, %v2289_v13  ;;  %2310 = vtanh.f32 %v1084_v0  ;;  %v3256_v1 = vmul.f32 0.5, %v1025_v63  ;;  %v630_v63 = vld [vmem:[%s2960_s20 + $0x178] sm:$0xff] }
 0x1a4   : > { %v2293_v22 = vpop.eup %2292  ;;  %v1717_v23 = vmul.f32 %v3191_v54, %v1647_v8  ;;  %v1646_v24 = vmul.f32 %v1582_v16, %v621_v6  ;;  %v1584_v37 = vmul.f32 0.5, %v1520_v17  ;;  %v1209_v27 = vadd.f32 1.0, %v2291_v18  ;;  %v629_v8 = vld [vmem:[%s2960_s20 + $0x170] sm:$0xff] }
 0x1a5   : > { %v2295_v31 = vpop.eup %2294  ;;  %v1649_v3 = vmul.f32 %v1585_v19, %v624_v55  ;;  %v1587_v33 = vmul.f32 0.5, %v1523_v29  ;;  %v1522_v32 = vadd.f32 1.0, %v2293_v22  ;;  %2312 = vtanh.f32 %v1087_v11 }
 0x1a6   : > { %v2297_v35 = vpop.eup %2296  ;;  %1781 = vst [vmem:[%s2982_s11 + $0x138] sm:$0xff] %v1717_v23  ;;  %v1716_v56 = vmul.f32 %v3191_v54, %v1646_v24  ;;  %v1648_v9 = vmul.f32 %v1584_v37, %v623_v20  ;;  %v1273_v39 = vmul.f32 0.5, %v1209_v27  ;;  %v1208_v40 = vadd.f32 1.0, %v2295_v31  ;;  %v569_v23 = vld [vmem:[%s2839_s24 + $0x190] sm:$0xff]  ;;  %v956_v37 = vpop.permute.xlu1 %955 }
 0x1a7   : > { %v2299_v57 = vpop.eup %2298  ;;  %v1719_v43 = vmul.f32 %v3191_v54, %v1649_v3  ;;  %v1651_v44 = vmul.f32 %v1587_v33, %v626_v26  ;;  %v1586_v45 = vmul.f32 0.5, %v1522_v32  ;;  %v1525_v46 = vadd.f32 1.0, %v2297_v35  ;;  %v572_v33 = vld [vmem:[%s2839_s24 + $0x1a8] sm:$0xff]  ;;  %v951_v35 = vpop.permute.xlu0 %950 }
 0x1a8   : > { %v2301_v28 = vpop.eup %2300  ;;  %1780 = vst [vmem:[%s2982_s11 + $0x130] sm:$0xff] %v1716_v56  ;;  %v1718_v41 = vmul.f32 %v3191_v54, %v1648_v9  ;;  %v1524_v58 = vadd.f32 1.0, %v2299_v57  ;;  %v1337_v48 = vmul.f32 %v1273_v39, %v568_v34  ;;  %v1272_v49 = vmul.f32 0.5, %v1208_v40  ;;  %v511_v34 = vld [vmem:[%s2831_s2 + $0x1c0] sm:$0xff]  ;;  %v514_v40 = vld [vmem:[%s2831_s2 + $0x1d8] sm:$0xff]  ;;  %v513_v57 = vld [vmem:[%s2831_s2 + $0x1d0] sm:$0xff] }
 0x1a9   : > { %v2303_v52 = vpop.eup %2302  ;;  %1783 = vst [vmem:[%s2982_s11 + $0x148] sm:$0xff] %v1719_v43  ;;  %v1721_v14 = vmul.f32 %v3191_v54, %v1651_v44  ;;  %v1650_v53 = vmul.f32 %v1586_v45, %v625_v38  ;;  %v1589_v25 = vmul.f32 0.5, %v1525_v46  ;;  %v1211_v59 = vadd.f32 1.0, %v2301_v28  ;;  %v571_v38 = vld [vmem:[%s2839_s24 + $0x1a0] sm:$0xff]  ;;  %v574_v46 = vld [vmem:[%s2839_s24 + $0x1b8] sm:$0xff] }
 0x1aa   : > { %v2305_v50 = vpop.eup %2304  ;;  %1782 = vst [vmem:[%s2982_s11 + $0x140] sm:$0xff] %v1718_v41  ;;  %v1588_v60 = vmul.f32 0.5, %v1524_v58  ;;  %v1527_v36 = vadd.f32 1.0, %v2303_v52  ;;  %v1401_v0 = vmul.f32 0.5, %v1337_v48  ;;  %v1336_v62 = vmul.f32 %v1272_v49, %v567_v47  ;;  %v516_v47 = vld [vmem:[%s2831_s2 + $0x1e8] sm:$0xff]  ;;  %v515_v52 = vld [vmem:[%s2831_s2 + $0x1e0] sm:$0xff] }
 0x1ab   : > { %v2307_v2 = vpop.eup %2306  ;;  %1785 = vst [vmem:[%s2982_s11 + $0x158] sm:$0xff] %v1721_v14  ;;  %v1720_v4 = vmul.f32 %v3191_v54, %v1650_v53  ;;  %v1653_v7 = vmul.f32 %v1589_v25, %v628_v42  ;;  %v1526_v5 = vadd.f32 1.0, %v2305_v50  ;;  %v1275_v6 = vmul.f32 0.5, %v1211_v59  ;;  %v966_v59 = vpop.permute.xlu1 %965 }
 0x1ac   : > { %v2309_v10 = vpop.eup %2308  ;;  %v1652_v11 = vmul.f32 %v1588_v60, %v627_v30  ;;  %v1591_v13 = vmul.f32 0.5, %v1527_v36  ;;  %2314 = vtanh.f32 %v1401_v0  ;;  %v1400_v16 = vmul.f32 0.5, %v1336_v62  ;;  %v518_v30 = vld [vmem:[%s2831_s2 + $0x1f8] sm:$0xff]  ;;  %v517_v60 = vld [vmem:[%s2831_s2 + $0x1f0] sm:$0xff]  ;;  %v961_v36 = vpop.permute.xlu0 %960 }
 0x1ad   : > { %v2311_v55 = vpop.eup %2310  ;;  %1784 = vst [vmem:[%s2982_s11 + $0x150] sm:$0xff] %v1720_v4  ;;  %v1723_v17 = vmul.f32 %v3191_v54, %v1653_v7  ;;  %v1590_v18 = vmul.f32 0.5, %v1526_v5  ;;  %v1339_v19 = vmul.f32 %v1275_v6, %v570_v15  ;;  %v1210_v20 = vadd.f32 1.0, %v2307_v2  ;;  %v632_v7 = vld [vmem:[%s2960_s20 + $0x188] sm:$0xff] }
 0x1ae   : > { %v1722_v29 = vmul.f32 %v3191_v54, %v1652_v11  ;;  %v1655_v22 = vmul.f32 %v1591_v13, %v630_v63  ;;  %2316 = vtanh.f32 %v1400_v16  ;;  %v1213_v24 = vadd.f32 1.0, %v2309_v10  ;;  %v631_v13 = vld [vmem:[%s2960_s20 + $0x180] sm:$0xff] }
 0x1af   : > { %v2313_v26 = vpop.eup %2312  ;;  %1787 = vst [vmem:[%s2982_s11 + $0x168] sm:$0xff] %v1723_v17  ;;  %v1654_v27 = vmul.f32 %v1590_v18, %v629_v8  ;;  %v1403_v31 = vmul.f32 0.5, %v1339_v19  ;;  %v1274_v3 = vmul.f32 0.5, %v1210_v20  ;;  %v1212_v32 = vadd.f32 1.0, %v2311_v55 }
 0x1b0   : > { %1786 = vst [vmem:[%s2982_s11 + $0x160] sm:$0xff] %v1722_v29  ;;  %v1725_v56 = vmul.f32 %v3191_v54, %v1655_v22  ;;  %v1277_v9 = vmul.f32 0.5, %v1213_v24  ;;  %v1215_v39 = vadd.f32 1.0, %v2313_v26  ;;  %2318 = vtanh.f32 %v3252_v12  ;;  %v573_v22 = vld [vmem:[%s2839_s24 + $0x1b0] sm:$0xff]  ;;  %v634_v26 = vld [vmem:[%s2960_s20 + $0x198] sm:$0xff] }
 0x1b1   : > { %v1724_v43 = vmul.f32 %v3191_v54, %v1654_v27  ;;  %2320 = vtanh.f32 %v1403_v31  ;;  %v1338_v44 = vmul.f32 %v1274_v3, %v569_v23  ;;  %v1276_v45 = vmul.f32 0.5, %v1212_v32 }
 0x1b2   : > { %1789 = vst [vmem:[%s2982_s11 + $0x178] sm:$0xff] %v1725_v56  ;;  %v1341_v28 = vmul.f32 %v1277_v9, %v572_v33  ;;  %v1279_v41 = vmul.f32 0.5, %v1215_v39  ;;  %2322 = vtanh.f32 %v3256_v1  ;;  %v1024_v42 = vmul.f32 %v3258_v21, %v511_v34  ;;  %v576_v33 = vld [vmem:[%s2839_s24 + $0x1c8] sm:$0xff] }
 0x1b3   : > { %1788 = vst [vmem:[%s2982_s11 + $0x170] sm:$0xff] %v1724_v43  ;;  %v1402_v12 = vmul.f32 0.5, %v1338_v44  ;;  %v1340_v58 = vmul.f32 %v1276_v45, %v571_v38  ;;  %v1027_v48 = vmul.f32 %v3271_v51, %v514_v40  ;;  %v1026_v49 = vmul.f32 %v3276_v61, %v513_v57  ;;  %v633_v57 = vld [vmem:[%s2960_s20 + $0x190] sm:$0xff] }
 0x1b4   : > { %v1405_v14 = vmul.f32 0.5, %v1341_v28  ;;  %v1343_v53 = vmul.f32 %v1279_v41, %v574_v46  ;;  %v1029_v25 = vmul.f32 %v956_v37, %v516_v47  ;;  %v1088_v1 = vmul.f32 0.5, %v1024_v42  ;;  %v636_v41 = vld [vmem:[%s2960_s20 + $0x1a8] sm:$0xff] }
 0x1b5   : > { %2324 = vtanh.f32 %v1402_v12  ;;  %v1404_v50 = vmul.f32 0.5, %v1340_v58  ;;  %v1091_v62 = vmul.f32 0.5, %v1027_v48  ;;  %v1028_v51 = vmul.f32 %v951_v35, %v515_v52  ;;  %v635_v48 = vld [vmem:[%s2960_s20 + $0x1a0] sm:$0xff] }
 0x1b6   : > { %v2315_v21 = vpop.eup %2314  ;;  %2326 = vtanh.f32 %v1405_v14  ;;  %v1407_v0 = vmul.f32 0.5, %v1343_v53  ;;  %v1090_v61 = vmul.f32 0.5, %v1026_v49  ;;  %v1031_v2 = vmul.f32 %v966_v59, %v518_v30  ;;  %v638_v30 = vld [vmem:[%s2960_s20 + $0x1b8] sm:$0xff] }
 0x1b7   : > { %v1529_v15 = vadd.f32 1.0, %v2315_v21  ;;  %2328 = vtanh.f32 %v1404_v50  ;;  %v1093_v63 = vmul.f32 0.5, %v1029_v25  ;;  %v1030_v5 = vmul.f32 %v961_v36, %v517_v60  ;;  %v575_v36 = vld [vmem:[%s2839_s24 + $0x1c0] sm:$0xff] }
 0x1b8   : > { %v2317_v4 = vpop.eup %2316  ;;  %2330 = vtanh.f32 %v1407_v0  ;;  %v1092_v8 = vmul.f32 0.5, %v1028_v51  ;;  %v1095_v16 = vmul.f32 0.5, %v1031_v2 }
 0x1b9   : > { %v1593_v6 = vmul.f32 0.5, %v1529_v15  ;;  %v1528_v10 = vadd.f32 1.0, %v2317_v4  ;;  %2332 = vtanh.f32 %v1088_v1  ;;  %v1094_v23 = vmul.f32 0.5, %v1030_v5  ;;  %v577_v5 = vld [vmem:[%s2839_s24 + $0x1d0] sm:$0xff] }
 0x1ba   : > { %v2319_v11 = vpop.eup %2318  ;;  %2334 = vtanh.f32 %v1091_v62 }
 0x1bb   : > { %v2321_v55 = vpop.eup %2320  ;;  %v1657_v17 = vmul.f32 %v1593_v6, %v632_v7  ;;  %v1592_v18 = vmul.f32 0.5, %v1528_v10  ;;  %v1214_v19 = vadd.f32 1.0, %v2319_v11  ;;  %2336 = vtanh.f32 %v1090_v61  ;;  %v578_v61 = vld [vmem:[%s2839_s24 + $0x1d8] sm:$0xff] }
 0x1bc   : > { %v2323_v20 = vpop.eup %2322  ;;  %v1531_v29 = vadd.f32 1.0, %v2321_v55  ;;  %2338 = vtanh.f32 %v1093_v63 }
 0x1bd   : > { %v1727_v24 = vmul.f32 %v3191_v54, %v1657_v17  ;;  %v1656_v37 = vmul.f32 %v1592_v18, %v631_v13  ;;  %v1278_v27 = vmul.f32 0.5, %v1214_v19  ;;  %v1217_v31 = vadd.f32 1.0, %v2323_v20 }
 0x1be   : > { %v1595_v3 = vmul.f32 0.5, %v1531_v29  ;;  %2340 = vtanh.f32 %v1092_v8 }
 0x1bf   : > { %v2325_v32 = vpop.eup %2324  ;;  %1791 = vst [vmem:[%s2982_s11 + $0x188] sm:$0xff] %v1727_v24  ;;  %v1726_v34 = vmul.f32 %v3191_v54, %v1656_v37  ;;  %v1342_v35 = vmul.f32 %v1278_v27, %v573_v22  ;;  %v1281_v56 = vmul.f32 0.5, %v1217_v31  ;;  %2342 = vtanh.f32 %v1095_v16  ;;  %v580_v16 = vld [vmem:[%s2839_s24 + $0x1e8] sm:$0xff]  ;;  %v579_v24 = vld [vmem:[%s2839_s24 + $0x1e0] sm:$0xff] }
 0x1c0   : > { %v2327_v9 = vpop.eup %2326  ;;  %v1659_v38 = vmul.f32 %v1595_v3, %v634_v26  ;;  %v1530_v39 = vadd.f32 1.0, %v2325_v32  ;;  %2344 = vtanh.f32 %v1094_v23  ;;  %v582_v3 = vld [vmem:[%s2839_s24 + $0x1f8] sm:$0xff] }
 0x1c1   : > { %v2329_v40 = vpop.eup %2328  ;;  %1790 = vst [vmem:[%s2982_s11 + $0x180] sm:$0xff] %v1726_v34  ;;  %v1533_v43 = vadd.f32 1.0, %v2327_v9  ;;  %v1406_v44 = vmul.f32 0.5, %v1342_v35  ;;  %v1345_v45 = vmul.f32 %v1281_v56, %v576_v33  ;;  %v581_v35 = vld [vmem:[%s2839_s24 + $0x1f0] sm:$0xff]  ;;  %s2455_s24 = scalar_lea.vmem %s3364_s28, 8192 }
 0x1c2   : > { %v2331_v46 = vpop.eup %2330  ;;  %v1729_v47 = vmul.f32 %v3191_v54, %v1659_v38  ;;  %v1594_v28 = vmul.f32 0.5, %v1530_v39  ;;  %v1532_v42 = vadd.f32 1.0, %v2329_v40  ;;  %p2456_p8 = scmp.ne.s32.totalorder %s3364_s28, %s2455_s24  ;;  %p2463_p13 = scmp.lt.s32.totalorder %s2461_s30, %s2455_s24 }
 0x1c3   : > { %v2333_v12 = vpop.eup %2332  ;;  %v1597_v58 = vmul.f32 0.5, %v1533_v43  ;;  %v1535_v49 = vadd.f32 1.0, %v2331_v46  ;;  %2346 = vtanh.f32 %v1406_v44  ;;  %v1409_v52 = vmul.f32 0.5, %v1345_v45  ;;  %v637_v44 = vld [vmem:[%s2960_s20 + $0x1b0] sm:$0xff] }
 0x1c4   : > { %v2335_v14 = vpop.eup %2334  ;;  %1793 = vst [vmem:[%s2982_s11 + $0x198] sm:$0xff] %v1729_v47  ;;  %v1658_v53 = vmul.f32 %v1594_v28, %v633_v57  ;;  %v1596_v25 = vmul.f32 0.5, %v1532_v42  ;;  %v1216_v59 = vadd.f32 1.0, %v2333_v12  ;;  %v640_v42 = vld [vmem:[%s2960_s20 + $0x1c8] sm:$0xff]  ;;  %p2457_p1 = pnand %p2456_p8, %p3474_p9  ;;  %p2464_p12 = por %p2463_p13, %p2462_p11 }
 0x1c5   : > { %v2337_v50 = vpop.eup %2336  ;;  %v1661_v1 = vmul.f32 %v1597_v58, %v636_v41  ;;  %v1599_v60 = vmul.f32 0.5, %v1535_v49  ;;  %2348 = vtanh.f32 %v1409_v52  ;;  %v1219_v21 = vadd.f32 1.0, %v2335_v14 }
 0x1c6   : > { %v2339_v0 = vpop.eup %2338  ;;  %v1728_v62 = vmul.f32 %v3191_v54, %v1658_v53  ;;  %v1660_v51 = vmul.f32 %v1596_v25, %v635_v48  ;;  %v1280_v15 = vmul.f32 0.5, %v1216_v59  ;;  %v1218_v2 = vadd.f32 1.0, %v2337_v50  ;;  %v639_v50 = vld [vmem:[%s2960_s20 + $0x1c0] sm:$0xff]  ;;  %p2458_p5 = pneg %p2457_p1 }
 0x1c7   : > { %v1731_v4 = vmul.f32 %v3191_v54, %v1661_v1  ;;  %v1663_v7 = vmul.f32 %v1599_v60, %v638_v30  ;;  %v1283_v63 = vmul.f32 0.5, %v1219_v21  ;;  %v1221_v6 = vadd.f32 1.0, %v2339_v0  ;;  %v642_v21 = vld [vmem:[%s2960_s20 + $0x1d8] sm:$0xff] }
 0x1c8   : > { %v2341_v10 = vpop.eup %2340  ;;  %1792 = vst [vmem:[%s2982_s11 + $0x190] sm:$0xff] %v1728_v62  ;;  %v1730_v11 = vmul.f32 %v3191_v54, %v1660_v51  ;;  %v1344_v13 = vmul.f32 %v1280_v15, %v575_v36  ;;  %v1282_v8 = vmul.f32 0.5, %v1218_v2  ;;  %v641_v51 = vld [vmem:[%s2960_s20 + $0x1d0] sm:$0xff]  ;;  %p2465_p10 = pnand %p2464_p12, %p2458_p5 }
 0x1c9   : > { %v2343_v55 = vpop.eup %2342  ;;  %1795 = vst [vmem:[%s2982_s11 + $0x1a8] sm:$0xff] %v1731_v4  ;;  %v1733_v17 = vmul.f32 %v3191_v54, %v1663_v7  ;;  %v1347_v18 = vmul.f32 %v1283_v63, %v578_v61  ;;  %v1285_v19 = vmul.f32 0.5, %v1221_v6  ;;  %v1220_v20 = vadd.f32 1.0, %v2341_v10  ;;  %v644_v7 = vld [vmem:[%s2960_s20 + $0x1e8] sm:$0xff] }
 0x1ca   : > { %v2345_v29 = vpop.eup %2344  ;;  %1794 = vst [vmem:[%s2982_s11 + $0x1a0] sm:$0xff] %v1730_v11  ;;  %v1408_v22 = vmul.f32 0.5, %v1344_v13  ;;  %v1346_v23 = vmul.f32 %v1282_v8, %v577_v5  ;;  %v1223_v37 = vadd.f32 1.0, %v2343_v55 }
 0x1cb   : > { %1797 = vst [vmem:[%s2982_s11 + $0x1b8] sm:$0xff] %v1733_v17  ;;  %v1411_v26 = vmul.f32 0.5, %v1347_v18  ;;  %v1349_v27 = vmul.f32 %v1285_v19, %v580_v16  ;;  %v1284_v31 = vmul.f32 0.5, %v1220_v20  ;;  %v1222_v33 = vadd.f32 1.0, %v2345_v29  ;;  %v643_v16 = vld [vmem:[%s2960_s20 + $0x1e0] sm:$0xff]  ;;  %v646_v20 = vld [vmem:[%s2960_s20 + $0x1f8] sm:$0xff] }
 0x1cc   : > { %2350 = vtanh.f32 %v1408_v22  ;;  %v1410_v32 = vmul.f32 0.5, %v1346_v23  ;;  %v1287_v34 = vmul.f32 0.5, %v1223_v37 }
 0x1cd   : > { %v2347_v56 = vpop.eup %2346  ;;  %2352 = vtanh.f32 %v1411_v26  ;;  %v1413_v9 = vmul.f32 0.5, %v1349_v27  ;;  %v1348_v38 = vmul.f32 %v1284_v31, %v579_v24  ;;  %v1286_v39 = vmul.f32 0.5, %v1222_v33  ;;  %v645_v24 = vld [vmem:[%s2960_s20 + $0x1f0] sm:$0xff] }
 0x1ce   : > { %v1534_v40 = vadd.f32 1.0, %v2347_v56  ;;  %2354 = vtanh.f32 %v1410_v32  ;;  %v1351_v57 = vmul.f32 %v1287_v34, %v582_v3 }
 0x1cf   : > { %v2349_v43 = vpop.eup %2348  ;;  %2356 = vtanh.f32 %v1413_v9  ;;  %v1412_v45 = vmul.f32 0.5, %v1348_v38  ;;  %v1350_v46 = vmul.f32 %v1286_v39, %v581_v35 }
 0x1d0   : > { %v1598_v47 = vmul.f32 0.5, %v1534_v40  ;;  %v1537_v28 = vadd.f32 1.0, %v2349_v43  ;;  %v1415_v41 = vmul.f32 0.5, %v1351_v57 }
 0x1d1   : > { %2358 = vtanh.f32 %v1412_v45  ;;  %v1414_v12 = vmul.f32 0.5, %v1350_v46 }
 0x1d2   : > { %v1662_v58 = vmul.f32 %v1598_v47, %v637_v44  ;;  %v1601_v48 = vmul.f32 0.5, %v1537_v28  ;;  %2360 = vtanh.f32 %v1415_v41 }
 0x1d3   : > { %2362 = vtanh.f32 %v1414_v12 }
 0x1d4   : > { %v1732_v49 = vmul.f32 %v3191_v54, %v1662_v58  ;;  %v1665_v52 = vmul.f32 %v1601_v48, %v640_v42 }
 0x1d6   : > { %v2351_v14 = vpop.eup %2350  ;;  %1796 = vst [vmem:[%s2982_s11 + $0x1b0] sm:$0xff] %v1732_v49  ;;  %v1735_v53 = vmul.f32 %v3191_v54, %v1665_v52 }
 0x1d7   : > { %v2353_v25 = vpop.eup %2352  ;;  %v1536_v30 = vadd.f32 1.0, %v2351_v14 }
 0x1d8   : > { %v2355_v59 = vpop.eup %2354  ;;  %1799 = vst [vmem:[%s2982_s11 + $0x1c8] sm:$0xff] %v1735_v53  ;;  %v1539_v1 = vadd.f32 1.0, %v2353_v25 }
 0x1d9   : > { %v2357_v60 = vpop.eup %2356  ;;  %v1600_v36 = vmul.f32 0.5, %v1536_v30  ;;  %v1538_v0 = vadd.f32 1.0, %v2355_v59 }
 0x1da   : > { %v1603_v62 = vmul.f32 0.5, %v1539_v1  ;;  %v1541_v15 = vadd.f32 1.0, %v2357_v60 }
 0x1db   : > { %v2359_v61 = vpop.eup %2358  ;;  %v1664_v2 = vmul.f32 %v1600_v36, %v639_v50  ;;  %v1602_v4 = vmul.f32 0.5, %v1538_v0 }
 0x1dc   : > { %v2361_v63 = vpop.eup %2360  ;;  %v1667_v5 = vmul.f32 %v1603_v62, %v642_v21  ;;  %v1605_v6 = vmul.f32 0.5, %v1541_v15  ;;  %v1540_v10 = vadd.f32 1.0, %v2359_v61 }
 0x1dd   : > { %v2363_v11 = vpop.eup %2362  ;;  %v1734_v13 = vmul.f32 %v3191_v54, %v1664_v2  ;;  %v1666_v8 = vmul.f32 %v1602_v4, %v641_v51  ;;  %v1543_v55 = vadd.f32 1.0, %v2361_v63 }
 0x1de   : > { %v1737_v17 = vmul.f32 %v3191_v54, %v1667_v5  ;;  %v1669_v18 = vmul.f32 %v1605_v6, %v644_v7  ;;  %v1604_v19 = vmul.f32 0.5, %v1540_v10  ;;  %v1542_v29 = vadd.f32 1.0, %v2363_v11 }
 0x1df   : > { %1798 = vst [vmem:[%s2982_s11 + $0x1c0] sm:$0xff] %v1734_v13  ;;  %v1736_v22 = vmul.f32 %v3191_v54, %v1666_v8  ;;  %v1607_v23 = vmul.f32 0.5, %v1543_v55 }
 0x1e0   : > { %1801 = vst [vmem:[%s2982_s11 + $0x1d8] sm:$0xff] %v1737_v17  ;;  %v1739_v37 = vmul.f32 %v3191_v54, %v1669_v18  ;;  %v1668_v26 = vmul.f32 %v1604_v19, %v643_v16  ;;  %v1606_v27 = vmul.f32 0.5, %v1542_v29 }
 0x1e1   : > { %1800 = vst [vmem:[%s2982_s11 + $0x1d0] sm:$0xff] %v1736_v22  ;;  %v1671_v31 = vmul.f32 %v1607_v23, %v646_v20 }
 0x1e2   : > { %1803 = vst [vmem:[%s2982_s11 + $0x1e8] sm:$0xff] %v1739_v37  ;;  %v1738_v3 = vmul.f32 %v3191_v54, %v1668_v26  ;;  %v1670_v33 = vmul.f32 %v1606_v27, %v645_v24 }
 0x1e3   : > { %v1741_v32 = vmul.f32 %v3191_v54, %v1671_v31 }
 0x1e4   : > { %1802 = vst [vmem:[%s2982_s11 + $0x1e0] sm:$0xff] %v1738_v3  ;;  %v1740_v34 = vmul.f32 %v3191_v54, %v1670_v33 }
 0x1e5   : > { %1805 = vst [vmem:[%s2982_s11 + $0x1f8] sm:$0xff] %v1741_v32 }
 0x1e6   : > { %1804 = vst [vmem:[%s2982_s11 + $0x1f0] sm:$0xff] %v1740_v34 }
 0x1e7   : > { %2468 = shalt.err (!%p2465_p10)
}
 0x1e8   : > { %s2469_s26 = scalar_lea.hbm %s3370_s13, 8192  ;;  %s2473_s14 = scalar_lea.hbm %s3433_s5, 32768 }
 0x1e9   : > { %p2470_p4 = scmp.ne.s32.totalorder %s3370_s13, %s2469_s26  ;;  %p2474_p2 = scmp.lt.u32.totalorder %s3370_s13, %s3433_s5 }
 0x1ea   : > { %p2475_p0 = scmp.lt.u32.totalorder %s2473_s14, %s2469_s26  ;;  %p2477_p8 = scmp.lt.u32.totalorder %s2469_s26, %s3370_s13 }
 0x1eb   : > { %p2471_p6 = pnand %p2470_p4, %p3474_p9 }
 0x1ec   : > { %p2476_p7 = por %p2475_p0, %p2474_p2 }
 0x1ed   : > { %p2472_p3 = pneg %p2471_p6 }
 0x1ee   : > { %p2478_p1 = por %p2477_p8, %p2476_p7 }
 0x1f0   : > { %p2479_p5 = pnand %p2478_p1, %p2472_p3 }
 0x1f2   : > { %2482 = shalt.err (!%p2479_p5)
}
 0x1f3   : > { %s2567_s6 = smov 128   ;;  %s2568_s15 = smov 256  }
 0x1f4   : > { %s2569_s20 = smov 8  }
 0x1f5   : > { %2017 = dma.vmem_to_hbm [thread:$0]  (%p3474_p9), %s3364_s28, 8192, %s3370_s13, %s1807_s10, %s2567_s6, %s2568_s15, %s2569_s20  }
 0x1f6 PF: > { %s3475_s11 = sld [smem:[#allocation17_spill]]  ;;  %p2034_p11 = scmp.ge.s32.totalorder %s2557_s25, 2 }
 0x1f7   : > { %s1836_s17 = sand.u32 1, %s2529_s18  }
 0x1f8   : > { %s1837_s22 = scalar_lea.sflag [#allocation4], %s1836_s17 }
 0x1fc   : > { %p3476_p13 = scmp.ne.s32.totalorder %s3475_s11, 0 }
 0x1fe   : > { %p2030_p12 = pnand %p2034_p11, %p3476_p13 }
 0x200   : > { %2524 = dma.done.wait (!%p2030_p12), %s1837_s22, 8192  }
 0x201   : > { %2526 = vsyncadd (!%p2030_p12), %s1837_s22, 4294959104  ;;  %s24_s25 = sadd.s32 1, %s2557_s25   ;;  %s3477_s21 = sld [smem:[#allocation12_spill]] }
 0x202   : > { %p21_p10 = scmp.ge.s32.totalorder %s24_s25, 6   ;;  %s3478_s20 = sld [smem:[#allocation18_spill]] }
 0x203   : > { %s3479_s9 = sld [smem:[#allocation13_spill]]  ;;  %s3480_s22 = sld [smem:[#allocation14_spill]] }
 0x204   : > { %s3481_s23 = sld [smem:[#allocation15_spill]]  ;;  %s3482_s24 = sld [smem:[#allocation16_spill]] }
 0x205   : > { %s3483_s18 = smov %s2533_s19  ;;  %23 = sbr.rel (!%p21_p10) target bundleno = 12 (0xc), region = 115 }
 0x207   : > { %s3484_s19 = smov %s3477_s21 }
 0x209   : > { %s3485_s21 = smov %s3479_s9 }
 0x20c   :  { %1842 = vsyncpa [#allocation3], 1 }
 0x20d   :  { %1844 = vsyncpa [#allocation3 + $0x1], 1 }
 0x20e   :  { %1845 = vsyncpa [#allocation6], 1 }
 0x20f   :  { %1847 = vsyncpa [#allocation6 + $0x1], 1 }
 0x210   :  { %1848 = vsyncpa [#allocation4], 1 }
 0x211   :  { %1850 = vsyncpa [#allocation4 + $0x1], 1 }

</bundles_post_ra>
